<compile_context>
chip_gen: v5e
topology: v5e:2x2
jax: 0.10.0
libtpu: 0.0.40
codegen_flags: <defaults>
</compile_context>

<pallas_src>
import functools

import jax
import jax.numpy as jnp
from jax.experimental import pallas as pl
from jax.experimental.pallas import tpu as pltpu


def _fused_kernel(x_ref, w_ref, b_ref, o_ref):
    # x_ref: (Cin, TM)  w_ref: (Cout, Cin)  b_ref: (Cout, 1)  o_ref: (Cout, TM)
    x = x_ref[...]
    w = w_ref[...]
    cin = x.shape[0]
    y1 = b_ref[...]                                   # (Cout, 1) broadcasts up
    for c in range(cin):                              # tiny static Cin loop (VPU FMAs)
        y1 = y1 + w[:, c:c + 1] * x[c:c + 1, :]       # (Cout,1)*(1,TM)->(Cout,TM)
    # Fused epilogue: pick a per-element multiplier, single multiply.
    #   y1 >= 3.32          -> leaky_relu(-0.674*y1) = -0.00674*y1  (y1 > 0 there)
    #   0 <= y1 < 3.32      -> y1
    #   y1 < 0              -> 0.01*y1
    scale = jnp.where(y1 >= 3.32, -0.00674,
                      jnp.where(y1 >= 0.0, 1.0, 0.01))
    o_ref[...] = (y1 * scale).astype(o_ref.dtype)


@functools.partial(jax.jit, static_argnames=())
def model_forward(x_nchw, weight, bias):
    """x_nchw: (N, Cin, H, W) f32; weight: (Cin, Cout) f32; bias: (Cout,) f32."""
    N, Cin, H, W = x_nchw.shape
    Cout = weight.shape[1]
    M = N * H * W

    # NCHW -> (Cin, M).  For N == 1 this is a pure reshape (no data movement).
    if N == 1:
        x2d = x_nchw.reshape(Cin, M)
    else:
        x2d = jnp.transpose(x_nchw, (1, 0, 2, 3)).reshape(Cin, M)

    wT = jnp.transpose(weight)          # (Cout, Cin) -- 31x2, negligible
    b2d = bias.reshape(Cout, 1)

    # Lane-dim tile: full extent when small, else 3584 (multiple of 128) so the
    # 7161-pixel input runs in 2 grid steps (minimal per-step overhead, still
    # 2 "parallel" steps for v7x megacore and compute/writeback overlap).
    TM = M if M <= 3584 else 3584
    grid = (pl.cdiv(M, TM),)

    out2d = pl.pallas_call(
        _fused_kernel,
        out_shape=jax.ShapeDtypeStruct((Cout, M), jnp.float32),
        grid_spec=pltpu.PrefetchScalarGridSpec(
            num_scalar_prefetch=0,
            grid=grid,
            in_specs=[
                pl.BlockSpec((Cin, TM), lambda i: (0, i)),     # X slab along M
                pl.BlockSpec((Cout, Cin), lambda i: (0, 0)),   # Wt, resident
                pl.BlockSpec((Cout, 1), lambda i: (0, 0)),     # bias, resident
            ],
            out_specs=pl.BlockSpec((Cout, TM), lambda i: (0, i)),
        ),
        compiler_params=pltpu.CompilerParams(
            dimension_semantics=("parallel",)),
    )(x2d, wT, b2d)

    # (Cout, M) -> NCHW.  Pure reshape for N == 1.
    if N == 1:
        return out2d.reshape(1, Cout, H, W)
    return jnp.transpose(out2d.reshape(Cout, N, H, W), (1, 0, 2, 3))


def _reference(x_nchw, weight, bias):
    # pure-JAX reference of the original module's math (two-multiply form)
    y1 = jnp.einsum("nchw,cd->ndhw", x_nchw, weight) + bias[None, :, None, None]
    y4 = jnp.where(y1 < 3.32, y1, y1 * -0.674)
    return jnp.where(y4 >= 0.0, y4, 0.01 * y4)


if __name__ == "__main__":
    key = jax.random.PRNGKey(0)
    kx, kw, kb = jax.random.split(key, 3)

    Cin, Cout = 2, 31
    # Deterministic parameter init (PyTorch-style uniform bound 1/sqrt(fan)).
    bound = 1.0 / (Cin ** 0.5)
    weight = jax.random.uniform(kw, (Cin, Cout), jnp.float32, -bound, bound)
    bias = jax.random.uniform(kb, (Cout,), jnp.float32, -bound, bound)

    # Input matching the module's driver: (1, 2, 93, 77)
    x = jax.random.normal(kx, (1, 2, 93, 77), jnp.float32)

    out = model_forward(x, weight, bias)
    out = jax.block_until_ready(out)

    ref = _reference(x, weight, bias)
    assert out.shape == (1, 31, 93, 77), out.shape
    assert jnp.allclose(out, ref, atol=1e-5, rtol=1e-5)

    print("KERNEL_OK")
</pallas_src>

<mosaic_0001>
module attributes {stable_mosaic.version = 11 : i64} {
  func.func @_fused_kernel(%arg0: i32, %arg1: memref<2x3584xf32, #tpu.memory_space<vmem>>, %arg2: memref<31x2xf32, #tpu.memory_space<vmem>>, %arg3: memref<31x1xf32, #tpu.memory_space<vmem>>, %arg4: memref<31x3584xf32, #tpu.memory_space<vmem>>) attributes {dimension_semantics = [#tpu.dimension_semantics<parallel>], iteration_bounds = array<i64: 2>, scalar_prefetch = 0 : i64, scratch_operands = 0 : i64, tpu.core_type = #tpu.core_type<tc>, window_params = [{transform_indices = @transform_0, window_bounds = array<i64: 2, 3584>}, {pipeline_mode = #tpu.pipeline_mode<synchronous>, transform_indices = @transform_1, window_bounds = array<i64: 31, 2>}, {pipeline_mode = #tpu.pipeline_mode<synchronous>, transform_indices = @transform_2, window_bounds = array<i64: 31, 1>}, {transform_indices = @transform_3, window_bounds = array<i64: 31, 3584>}]} {
    %c0 = arith.constant 0 : index
    %c0_0 = arith.constant 0 : index
    %0 = vector.load %arg1[%c0, %c0_0] : memref<2x3584xf32, #tpu.memory_space<vmem>>, vector<2x3584xf32>
    %c0_1 = arith.constant 0 : index
    %c0_2 = arith.constant 0 : index
    %1 = vector.load %arg2[%c0_1, %c0_2] : memref<31x2xf32, #tpu.memory_space<vmem>>, vector<31x2xf32>
    %c0_3 = arith.constant 0 : index
    %c0_4 = arith.constant 0 : index
    %2 = vector.load %arg3[%c0_3, %c0_4] : memref<31x1xf32, #tpu.memory_space<vmem>>, vector<31x1xf32>
    %3 = vector.extract_strided_slice %1 {offsets = [0, 0], sizes = [31, 1], strides = [1, 1]} : vector<31x2xf32> to vector<31x1xf32>
    %4 = vector.extract_strided_slice %0 {offsets = [0, 0], sizes = [1, 3584], strides = [1, 1]} : vector<2x3584xf32> to vector<1x3584xf32>
    %5 = vector.broadcast %3 : vector<31x1xf32> to vector<31x3584xf32>
    %6 = vector.broadcast %4 : vector<1x3584xf32> to vector<31x3584xf32>
    %7 = arith.mulf %5, %6 : vector<31x3584xf32>
    %8 = vector.broadcast %2 : vector<31x1xf32> to vector<31x3584xf32>
    %9 = arith.addf %8, %7 : vector<31x3584xf32>
    %10 = vector.extract_strided_slice %1 {offsets = [0, 1], sizes = [31, 1], strides = [1, 1]} : vector<31x2xf32> to vector<31x1xf32>
    %11 = vector.extract_strided_slice %0 {offsets = [1, 0], sizes = [1, 3584], strides = [1, 1]} : vector<2x3584xf32> to vector<1x3584xf32>
    %12 = vector.broadcast %10 : vector<31x1xf32> to vector<31x3584xf32>
    %13 = vector.broadcast %11 : vector<1x3584xf32> to vector<31x3584xf32>
    %14 = arith.mulf %12, %13 : vector<31x3584xf32>
    %15 = arith.addf %9, %14 : vector<31x3584xf32>
    %cst = arith.constant 3.320000e+00 : f32
    %16 = vector.broadcast %cst : f32 to vector<31x3584xf32>
    %17 = arith.cmpf oge, %15, %16 : vector<31x3584xf32>
    %cst_5 = arith.constant 0.000000e+00 : f32
    %18 = vector.broadcast %cst_5 : f32 to vector<31x3584xf32>
    %19 = arith.cmpf oge, %15, %18 : vector<31x3584xf32>
    %cst_6 = arith.constant 1.000000e+00 : f32
    %cst_7 = arith.constant 0.00999999977 : f32
    %20 = vector.broadcast %cst_6 : f32 to vector<31x3584xf32>
    %21 = vector.broadcast %cst_7 : f32 to vector<31x3584xf32>
    %22 = arith.select %19, %20, %21 : vector<31x3584xi1>, vector<31x3584xf32>
    %cst_8 = arith.constant -6.740000e-03 : f32
    %23 = vector.broadcast %cst_8 : f32 to vector<31x3584xf32>
    %24 = arith.select %17, %23, %22 : vector<31x3584xi1>, vector<31x3584xf32>
    %25 = arith.mulf %15, %24 : vector<31x3584xf32>
    %c0_9 = arith.constant 0 : index
    %c0_10 = arith.constant 0 : index
    %26 = vector.load %arg4[%c0_9, %c0_10] : memref<31x3584xf32, #tpu.memory_space<vmem>>, vector<31x3584xf32>
    tpu.vector_store %arg4[%c0_9, %c0_10], %25 {strides = array<i32>} : memref<31x3584xf32, #tpu.memory_space<vmem>>, vector<31x3584xf32>,
    return
  }
  func.func @transform_0(%arg0: i32) -> (i32, i32) {
    %c0_i32 = arith.constant 0 : i32
    %c0_i32_0 = arith.constant 0 : i32
    return %c0_i32, %arg0 : i32, i32
  }
  func.func @transform_1(%arg0: i32) -> (i32, i32) {
    %c0_i32 = arith.constant 0 : i32
    %c0_i32_0 = arith.constant 0 : i32
    %c0_i32_1 = arith.constant 0 : i32
    return %c0_i32, %c0_i32_0 : i32, i32
  }
  func.func @transform_2(%arg0: i32) -> (i32, i32) {
    %c0_i32 = arith.constant 0 : i32
    %c0_i32_0 = arith.constant 0 : i32
    %c0_i32_1 = arith.constant 0 : i32
    return %c0_i32, %c0_i32_0 : i32, i32
  }
  func.func @transform_3(%arg0: i32) -> (i32, i32) {
    %c0_i32 = arith.constant 0 : i32
    %c0_i32_0 = arith.constant 0 : i32
    return %c0_i32, %arg0 : i32, i32
  }
}

</mosaic_0001>

<bundles_post_ra>
// kernel: model_forward.1
= control target key start
LH: loop header
LB: loop body
LE: loop exit
PB: predicated region body
PF: predicated region fallthrough
CT: control target
= control target key end

     0   :  { %s1924_s12 = smov 0   ;;  %s1926_s13 = smov 0   ;;  %s4383_s0 = inlined_call_operand.vmem [shape: f32[2,7161], index: 0, kind: input, shape index: {}]   ;;  %s4384_s1 = inlined_call_operand.vmem [shape: f32[31,2], index: 1, kind: input, shape index: {}]   ;;  %s4385_s2 = inlined_call_operand.vmem [shape: f32[31,1], index: 2, kind: input, shape index: {}]   ;;  %s4386_s3 = inlined_call_operand.vmem [shape: f32[31,7161], index: 3, kind: output, shape index: {}]  }
   0x1   :  { %s1928_s14 = smov 0  }
   0x2 LB: > { %s1937_s15 = sadd.s32 4294967295, %s1899_s14   ;;  %s1939_s16 = sadd.s32 1, %s1899_s14   ;;  %s1899_s14 = sphi %s1928_s14, %s5035_s14   ;;  %s1895_s13 = sphi %s1926_s13, %s5034_s13   ;;  %s1891_s12 = sphi %s1924_s12, %s5033_s12  }
   0x3   : > { %s85_s17 = ssub.s32 %s1899_s14, %s1939_s16  ;;  %s88_s18 = sadd.s32 1, %s1895_s13 }
   0x4   : > { %p86_p0 = scmp.eq.s32.totalorder %s85_s17, 0  ;;  %p98_p1 = scmp.ne.s32.totalorder %s1895_s13, %s1891_s12 }
   0x5   : > { %p99_p2 = scmp.eq.s32.totalorder %s1937_s15, 1  ;;  %p1837_p3 = scmp.ge.s32.totalorder %s1899_s14, 1 }
   0x6   : > { %s1947_s19 = scalar_select %p86_p0, %s1895_s13, %s88_s18  }
   0x7   : > { %p1949_p4 = por %p99_p2, %p98_p1  ;;  %p138_p5 = scmp.lt.s32.totalorder %s1899_s14, 3 }
   0x9   : > { %p139_p6 = pnand %p1837_p3, %p138_p5 }
   0xb   : > { %142 = sbr.rel (%p139_p6) target bundleno = 543 (0x21f), region = 32 }
  0x10   : > { %v177_v0 = vld [vmem:[%s4384_s1 + $0x10] sm:$0xff]  ;;  %v175_v1 = vld [vmem:[%s4384_s1] sm:$0xff]  ;;  %v1901_v2 = vmov 0   ;;  %v178_v4 = vld [vmem:[%s4384_s1 + $0x18] sm:$0x7f]  ;;  %v1902_v9 = vmov 1  }
  0x11   : > { %1872 = vset.pattern.permute.xlu1 %v1901_v2  ;;  %1871 = vset.pattern.permute.xlu0 %v1901_v2  ;;  %v179_v3 = vld [vmem:[%s4385_s2] sm:$0xff]  ;;  %v176_v5 = vld [vmem:[%s4384_s1 + $0x8] sm:$0xff]  ;;  %v182_v7 = vld [vmem:[%s4385_s2 + $0x18] sm:$0x7f]  ;;  %s161_s10 = smul.u32 28, %s1937_s15  ;;  %s158_s21 = sand.u32 1, %s1891_s12  }
  0x12   : > { %195 = vperm.xlu1 %1872, %v177_v0   ;;  %185 = vperm.xlu0 %1871, %v175_v1   ;;  %v180_v6 = vld [vmem:[%s4385_s2 + $0x8] sm:$0xff]  ;;  %v181_v8 = vld [vmem:[%s4385_s2 + $0x10] sm:$0xff]  ;;  %s2583_s12 = smul.u32 896, %s158_s21 }
  0x13   : > { %1873 = vset.pattern.permute.xlu2 %v1901_v2  ;;  %p162_p7 = scmp.lt.s32.totalorder %s161_s10, 55  ;;  %s1842_s23 = smul.u32 (%p1949_p4), 224, %s1937_s15 }
  0x14   : > { %408 = vperm.xlu2 %1873, %v179_v3   ;;  %s2673_s22 = scalar_lea.vmem [#allocation2], %s2583_s12 }
  0x15   : > { %s5037_s10 = smov (!%p162_p7, %s161_s10), 55  ;;  %s4149_s26 = scalar_lea.vmem (%p1949_p4), %s4386_s3, %s1842_s23 }
  0x16   : > { %s1838_s11 = sshll.u32 %s5037_s10, 1 }
  0x17   : > { %s165_s18 = scalar_lea.vmem %s4383_s0, %s1838_s11 }
  0x18   : > { %v1981_v10 = vld [vmem:[%s165_s18] sm:$0xff]  ;;  %v1983_v11 = vld [vmem:[%s165_s18 + $0x8] sm:$0xff]  ;;  %v1985_v12 = vld [vmem:[%s165_s18 + $0x10] sm:$0xff] }
  0x19   : > { %v1987_v13 = vld [vmem:[%s165_s18 + $0x18] sm:$0xff]  ;;  %v210_v14 = vperm.slane %v1981_v10, 0  ;;  %v1990_v15 = vld [vmem:[%s165_s18 + $0x20] sm:$0xff]  ;;  %v211_v16 = vperm.slane %v1981_v10, 2  ;;  %v212_v17 = vperm.slane %v1981_v10, 4  ;;  %v213_v18 = vperm.slane %v1981_v10, 6 }
  0x1a   : > { %200 = vperm.xlu1 %1872, %v178_v4   ;;  %190 = vperm.xlu0 %1871, %v176_v5   ;;  %v214_v19 = vperm.slane %v1983_v11, 0  ;;  %v1996_v20 = vld [vmem:[%s165_s18 + $0x28] sm:$0xff]  ;;  %v215_v21 = vperm.slane %v1983_v11, 2  ;;  %v216_v22 = vperm.slane %v1983_v11, 4  ;;  %v217_v23 = vperm.slane %v1983_v11, 6  ;;  %v2002_v25 = vld [vmem:[%s165_s18 + $0x30] sm:$0xff] }
  0x1b   : > { %v218_v24 = vperm.slane %v1985_v12, 0  ;;  %v219_v26 = vperm.slane %v1985_v12, 2  ;;  %v220_v27 = vperm.slane %v1985_v12, 4  ;;  %v221_v28 = vperm.slane %v1985_v12, 6 }
  0x1c   : > { %413 = vperm.xlu2 %1873, %v180_v6   ;;  %v222_v29 = vperm.slane %v1987_v13, 0  ;;  %v223_v30 = vperm.slane %v1987_v13, 2  ;;  %v224_v31 = vperm.slane %v1987_v13, 4  ;;  %v225_v32 = vperm.slane %v1987_v13, 6 }
  0x1d   : > { %v226_v33 = vperm.slane %v1990_v15, 0  ;;  %v227_v34 = vperm.slane %v1990_v15, 2  ;;  %v228_v35 = vperm.slane %v1990_v15, 4  ;;  %v229_v36 = vperm.slane %v1990_v15, 6 }
  0x1e   : > { %v230_v37 = vperm.slane %v1996_v20, 0  ;;  %v231_v39 = vperm.slane %v1996_v20, 2  ;;  %v232_v40 = vperm.slane %v1996_v20, 4  ;;  %v233_v41 = vperm.slane %v1996_v20, 6 }
  0x1f   : > { %v234_v42 = vperm.slane %v2002_v25, 0  ;;  %v235_v43 = vperm.slane %v2002_v25, 2  ;;  %v236_v44 = vperm.slane %v2002_v25, 4  ;;  %v237_v45 = vperm.slane %v2002_v25, 6 }
  0x20   : > { %v2025_v46 = vperm.slane %v210_v14, 0  ;;  %v2027_v47 = vperm.slane %v211_v16, 0  ;;  %v2029_v48 = vperm.slane %v212_v17, 0  ;;  %v2031_v49 = vperm.slane %v213_v18, 0 }
  0x21   : > { %v2033_v50 = vperm.slane %v214_v19, 0  ;;  %v2035_v51 = vperm.slane %v215_v21, 0  ;;  %v2037_v52 = vperm.slane %v216_v22, 0  ;;  %v2039_v53 = vperm.slane %v217_v23, 0 }
  0x22   : > { %423 = vperm.xlu1 %1872, %v182_v7   ;;  %418 = vperm.xlu0 %1871, %v181_v8   ;;  %4546 = vst [vmem:[#allocation4_spill] sm:$0xff] %v2025_v46  ;;  %v2041_v54 = vperm.slane %v218_v24, 0  ;;  %v2043_v55 = vperm.slane %v219_v26, 0  ;;  %v2045_v56 = vperm.slane %v220_v27, 0  ;;  %v2047_v57 = vperm.slane %v221_v28, 0 }
  0x23   : > { %4547 = vst [vmem:[#allocation5_spill] sm:$0xff] %v2027_v47  ;;  %v2049_v58 = vperm.slane %v222_v29, 0  ;;  %v2051_v59 = vperm.slane %v223_v30, 0  ;;  %v2053_v60 = vperm.slane %v224_v31, 0  ;;  %v2055_v61 = vperm.slane %v225_v32, 0 }
  0x24   : > { %1874 = vset.pattern.permute.xlu2 %v1902_v9  ;;  %4548 = vst [vmem:[#allocation6_spill] sm:$0xff] %v2029_v48  ;;  %v2057_v62 = vperm.slane %v226_v33, 0  ;;  %v2059_v63 = vperm.slane %v227_v34, 0  ;;  %v2065_v2 = vperm.slane %v230_v37, 0  ;;  %v2067_v3 = vperm.slane %v231_v39, 0 }
  0x25   : > { %539 = vperm.xlu2 %1874, %v175_v1   ;;  %4549 = vst [vmem:[#allocation7_spill] sm:$0xff] %v2031_v49  ;;  %v2063_v1 = vperm.slane %v229_v36, 0  ;;  %v2073_v6 = vperm.slane %v234_v42, 0  ;;  %v2075_v7 = vperm.slane %v235_v43, 0  ;;  %v2077_v8 = vperm.slane %v236_v44, 0 }
  0x26   : > { %4550 = vst [vmem:[#allocation8_spill] sm:$0xff] %v2033_v50  ;;  %v554_v14 = vperm.slane %v1981_v10, 1  ;;  %v555_v16 = vperm.slane %v1981_v10, 3  ;;  %v556_v17 = vperm.slane %v1981_v10, 5  ;;  %v557_v18 = vperm.slane %v1981_v10, 7 }
  0x27   : > { %4551 = vst [vmem:[#allocation9_spill] sm:$0xff] %v2035_v51  ;;  %v558_v21 = vperm.slane %v1983_v11, 1  ;;  %v559_v22 = vperm.slane %v1983_v11, 3  ;;  %v560_v23 = vperm.slane %v1983_v11, 5  ;;  %v561_v24 = vperm.slane %v1983_v11, 7 }
  0x28   : > { %4552 = vst [vmem:[#allocation10_spill] sm:$0xff] %v2037_v52  ;;  %v562_v26 = vperm.slane %v1985_v12, 1  ;;  %v563_v27 = vperm.slane %v1985_v12, 3  ;;  %v564_v28 = vperm.slane %v1985_v12, 5  ;;  %v565_v29 = vperm.slane %v1985_v12, 7 }
  0x29   : > { %4553 = vst [vmem:[#allocation11_spill] sm:$0xff] %v2039_v53  ;;  %v566_v10 = vperm.slane %v1987_v13, 1  ;;  %v567_v30 = vperm.slane %v1987_v13, 3  ;;  %v568_v31 = vperm.slane %v1987_v13, 5  ;;  %v569_v32 = vperm.slane %v1987_v13, 7 }
  0x2a   : > { %1876 = vset.pattern.permute.xlu1 %v1902_v9  ;;  %1875 = vset.pattern.permute.xlu0 %v1902_v9  ;;  %4554 = vst [vmem:[#allocation12_spill] sm:$0xff] %v2041_v54  ;;  %v2079_v9 = vperm.slane %v237_v45, 0  ;;  %v570_v33 = vperm.slane %v1990_v15, 1  ;;  %v571_v11 = vperm.slane %v1990_v15, 3  ;;  %v572_v34 = vperm.slane %v1990_v15, 5 }
  0x2b   : > { %547 = vperm.xlu1 %1876, %v177_v0   ;;  %543 = vperm.xlu0 %1875, %v176_v5   ;;  %4555 = vst [vmem:[#allocation13_spill] sm:$0xff] %v2043_v55  ;;  %v2061_v0 = vperm.slane %v228_v35, 0  ;;  %v2071_v5 = vperm.slane %v233_v41, 0  ;;  %v573_v35 = vperm.slane %v1990_v15, 7  ;;  %v574_v36 = vperm.slane %v1996_v20, 1 }
  0x2c   : > { %4556 = vst [vmem:[#allocation14_spill] sm:$0xff] %v2045_v56  ;;  %v575_v12 = vperm.slane %v1996_v20, 3  ;;  %v576_v37 = vperm.slane %v1996_v20, 5  ;;  %v577_v39 = vperm.slane %v1996_v20, 7  ;;  %v579_v13 = vperm.slane %v2002_v25, 3 }
  0x2d   : > { %551 = vperm.xlu2 %1874, %v178_v4   ;;  %4557 = vst [vmem:[#allocation15_spill] sm:$0xff] %v2047_v57  ;;  %v2069_v4 = vperm.slane %v232_v40, 0  ;;  %v578_v40 = vperm.slane %v2002_v25, 1  ;;  %v580_v41 = vperm.slane %v2002_v25, 5  ;;  %v581_v42 = vperm.slane %v2002_v25, 7 }
  0x2e   : > { %4558 = vst [vmem:[#allocation16_spill] sm:$0xff] %v2049_v58  ;;  %v2111_v43 = vperm.slane %v554_v14, 1  ;;  %v2113_v44 = vperm.slane %v555_v16, 1  ;;  %v2115_v15 = vperm.slane %v556_v17, 1  ;;  %v2117_v45 = vperm.slane %v557_v18, 1 }
  0x2f   : > { %4559 = vst [vmem:[#allocation17_spill] sm:$0xff] %v2051_v59  ;;  %v2123_v20 = vperm.slane %v560_v23, 1  ;;  %v2131_v25 = vperm.slane %v564_v28, 1  ;;  %v2133_v14 = vperm.slane %v565_v29, 1  ;;  %v2135_v16 = vperm.slane %v566_v10, 1 }
  0x30   : > { %4560 = vst [vmem:[#allocation18_spill] sm:$0xff] %v2053_v60  ;;  %v2137_v17 = vperm.slane %v567_v30, 1  ;;  %v2139_v18 = vperm.slane %v568_v31, 1  ;;  %v2153_v28 = vperm.slane %v573_v35, 1  ;;  %v2155_v29 = vperm.slane %v574_v36, 1 }
  0x31   : > { %4561 = vst [vmem:[#allocation19_spill] sm:$0xff] %v2055_v61  ;;  %v2157_v10 = vperm.slane %v575_v12, 1  ;;  %v2159_v30 = vperm.slane %v576_v37, 1  ;;  %v2161_v31 = vperm.slane %v577_v39, 1 }
  0x32   : > { %4562 = vst [vmem:[#allocation20_spill] sm:$0xff] %v2057_v62 }
  0x33   : > { %4563 = vst [vmem:[#allocation21_spill] sm:$0xff] %v2059_v63 }
  0x34   : > { %4564 = vst [vmem:[#allocation22_spill] sm:$0xff] %v2061_v0 }
  0x35   : > { %4565 = vst [vmem:[#allocation23_spill] sm:$0xff] %v2063_v1 }
  0x36   : > { %4566 = vst [vmem:[#allocation24_spill] sm:$0xff] %v2065_v2 }
  0x37   : > { %4567 = vst [vmem:[#allocation25_spill] sm:$0xff] %v2067_v3 }
  0x38   : > { %4568 = vst [vmem:[#allocation26_spill] sm:$0xff] %v2069_v4 }
  0x39   : > { %4569 = vst [vmem:[#allocation27_spill] sm:$0xff] %v2071_v5 }
  0x3a   : > { %4570 = vst [vmem:[#allocation28_spill] sm:$0xff] %v2073_v6 }
  0x3b   : > { %4571 = vst [vmem:[#allocation29_spill] sm:$0xff] %v2075_v7  ;;  %v2129_v7 = vperm.slane %v563_v27, 1  ;;  %v2151_v27 = vperm.slane %v572_v34, 1 }
  0x3c   : > { %4572 = vst [vmem:[#allocation30_spill] sm:$0xff] %v2077_v8  ;;  %v2127_v8 = vperm.slane %v562_v26, 1  ;;  %v2149_v26 = vperm.slane %v571_v11, 1  ;;  %v2169_v11 = vperm.slane %v581_v42, 1 }
  0x3d   : > { %4573 = vst [vmem:[#allocation31_spill] sm:$0xff] %v2079_v9  ;;  %v2125_v9 = vperm.slane %v561_v24, 1  ;;  %v2147_v24 = vperm.slane %v570_v33, 1  ;;  %v2167_v33 = vperm.slane %v580_v41, 1 }
  0x3e   : > { %4575 = vst [vmem:[#allocation33_spill] sm:$0xff] %v2111_v43 }
  0x3f   : > { %4576 = vst [vmem:[#allocation34_spill] sm:$0xff] %v2113_v44 }
  0x40   : > { %4577 = vst [vmem:[#allocation35_spill] sm:$0xff] %v2115_v15 }
  0x41   : > { %4578 = vst [vmem:[#allocation36_spill] sm:$0xff] %v2117_v45 }
  0x42   : > { %4581 = vst [vmem:[#allocation39_spill] sm:$0xff] %v2123_v20 }
  0x43   : > { %4582 = vst [vmem:[#allocation40_spill] sm:$0xff] %v2125_v9 }
  0x44   : > { %4583 = vst [vmem:[#allocation41_spill] sm:$0xff] %v2127_v8 }
  0x45   : > { %4584 = vst [vmem:[#allocation42_spill] sm:$0xff] %v2129_v7 }
  0x46   : > { %4585 = vst [vmem:[#allocation43_spill] sm:$0xff] %v2131_v25 }
  0x47   : > { %4586 = vst [vmem:[#allocation44_spill] sm:$0xff] %v2133_v14 }
  0x48   : > { %4587 = vst [vmem:[#allocation45_spill] sm:$0xff] %v2135_v16 }
  0x49   : > { %4588 = vst [vmem:[#allocation46_spill] sm:$0xff] %v2137_v17 }
  0x4a   : > { %4589 = vst [vmem:[#allocation47_spill] sm:$0xff] %v2139_v18  ;;  %v4615_v18 = vld [vmem:[#allocation31_spill] sm:$0xff] }
  0x4b   : > { %4593 = vst [vmem:[#allocation51_spill] sm:$0xff] %v2147_v24 }
  0x4c   : > { %4594 = vst [vmem:[#allocation52_spill] sm:$0xff] %v2149_v26  ;;  %v4614_v26 = vld [vmem:[#allocation30_spill] sm:$0xff] }
  0x4d   : > { %4595 = vst [vmem:[#allocation53_spill] sm:$0xff] %v2151_v27 }
  0x4e   : > { %4596 = vst [vmem:[#allocation54_spill] sm:$0xff] %v2153_v28  ;;  %v4613_v28 = vld [vmem:[#allocation29_spill] sm:$0xff] }
  0x4f   : > { %4597 = vst [vmem:[#allocation55_spill] sm:$0xff] %v2155_v29 }
  0x50   : > { %4598 = vst [vmem:[#allocation56_spill] sm:$0xff] %v2157_v10 }
  0x51   : > { %4599 = vst [vmem:[#allocation57_spill] sm:$0xff] %v2159_v30 }
  0x52   : > { %4600 = vst [vmem:[#allocation58_spill] sm:$0xff] %v2161_v31 }
  0x53   : > { %4603 = vst [vmem:[#allocation61_spill] sm:$0xff] %v2167_v33 }
  0x54   : > { %4604 = vst [vmem:[#allocation62_spill] sm:$0xff] %v2169_v11 }
  0x6e   : > { %v2016_v38 = vpop.permute.xlu2 %408 }
  0x6f   : > { %4545 = vst [vmem:[#allocation3_spill] sm:$0xff] %v2016_v38  ;;  %v2121_v38 = vperm.slane %v559_v22, 1 }
  0x71   : > { %4580 = vst [vmem:[#allocation38_spill] sm:$0xff] %v2121_v38 }
  0x76   : > { %v2085_v19 = vpop.permute.xlu2 %413  ;;  %v4616_v16 = vld [vmem:[#allocation3_spill] sm:$0xff] }
  0x77   : > { %4574 = vst [vmem:[#allocation32_spill] sm:$0xff] %v2085_v19  ;;  %v2119_v19 = vperm.slane %v558_v21, 1  ;;  %v2141_v21 = vperm.slane %v569_v32, 1 }
  0x79   : > { %4579 = vst [vmem:[#allocation37_spill] sm:$0xff] %v2119_v19 }
  0x7a   : > { %4590 = vst [vmem:[#allocation48_spill] sm:$0xff] %v2141_v21  ;;  %v2165_v21 = vperm.slane %v579_v13, 1 }
  0x7c   : > { %4602 = vst [vmem:[#allocation60_spill] sm:$0xff] %v2165_v21 }
  0x7f   : > { %v2145_v23 = vpop.permute.xlu2 %539 }
  0x80   : > { %4592 = vst [vmem:[#allocation50_spill] sm:$0xff] %v2145_v23  ;;  %v2173_v34 = vmul.f32 %v2111_v43, %v2145_v23  ;;  %v2177_v35 = vmul.f32 %v2113_v44, %v2145_v23  ;;  %v2181_v36 = vmul.f32 %v2115_v15, %v2145_v23  ;;  %v2185_v12 = vmul.f32 %v2117_v45, %v2145_v23 }
  0x81   : > { %v2189_v37 = vmul.f32 %v2119_v19, %v2145_v23  ;;  %v2193_v39 = vmul.f32 %v2121_v38, %v2145_v23  ;;  %v2201_v13 = vmul.f32 %v2125_v9, %v2145_v23 }
  0x82   : > { %4605 = vst [vmem:[#allocation63_spill] sm:$0xff] %v2173_v34 }
  0x83   : > { %4606 = vst [vmem:[#allocation64_spill] sm:$0xff] %v2177_v35 }
  0x84   : > { %v2143_v22 = vpop.permute.xlu1 %195  ;;  %v186_v32 = vpop.permute.xlu0 %185  ;;  %4607 = vst [vmem:[#allocation65_spill] sm:$0xff] %v2181_v36 }
  0x85   : > { %4591 = vst [vmem:[#allocation49_spill] sm:$0xff] %v2143_v22  ;;  %v2163_v22 = vperm.slane %v578_v40, 1  ;;  %v2197_v40 = vmul.f32 %v2123_v20, %v2145_v23  ;;  %v294_v41 = vmul.f32 %v2025_v46, %v186_v32  ;;  %v295_v42 = vmul.f32 %v2027_v47, %v186_v32 }
  0x86   : > { %4608 = vst [vmem:[#allocation66_spill] sm:$0xff] %v2185_v12  ;;  %v296_v12 = vmul.f32 %v2029_v48, %v186_v32  ;;  %v298_v36 = vmul.f32 %v2033_v50, %v186_v32  ;;  %v300_v35 = vmul.f32 %v2037_v52, %v186_v32  ;;  %v302_v34 = vmul.f32 %v2041_v54, %v186_v32 }
  0x87   : > { %4601 = vst [vmem:[#allocation59_spill] sm:$0xff] %v2163_v22  ;;  %v304_v9 = vmul.f32 %v2045_v56, %v186_v32  ;;  %v305_v20 = vmul.f32 %v2047_v57, %v186_v32  ;;  %v306_v38 = vmul.f32 %v2049_v58, %v186_v32  ;;  %v307_v19 = vmul.f32 %v2051_v59, %v186_v32 }
  0x88   : > { %4609 = vst [vmem:[#allocation67_spill] sm:$0xff] %v2189_v37  ;;  %v297_v37 = vmul.f32 %v2031_v49, %v186_v32  ;;  %v308_v45 = vmul.f32 %v2053_v60, %v186_v32  ;;  %v309_v15 = vmul.f32 %v2055_v61, %v186_v32  ;;  %v310_v44 = vmul.f32 %v2057_v62, %v186_v32 }
  0x89   : > { %4610 = vst [vmem:[#allocation68_spill] sm:$0xff] %v2193_v39  ;;  %v299_v39 = vmul.f32 %v2035_v51, %v186_v32  ;;  %v311_v43 = vmul.f32 %v2059_v63, %v186_v32  ;;  %v312_v11 = vmul.f32 %v2061_v0, %v186_v32  ;;  %v313_v33 = vmul.f32 %v2063_v1, %v186_v32 }
  0x8a   : > { %4611 = vst [vmem:[#allocation69_spill] sm:$0xff] %v2197_v40  ;;  %v301_v40 = vmul.f32 %v2039_v53, %v186_v32  ;;  %v314_v22 = vmul.f32 %v2065_v2, %v186_v32  ;;  %v315_v31 = vmul.f32 %v2067_v3, %v186_v32  ;;  %v316_v30 = vmul.f32 %v2069_v4, %v186_v32 }
  0x8b   : > { %4612 = vst [vmem:[#allocation70_spill] sm:$0xff] %v2201_v13  ;;  %v303_v13 = vmul.f32 %v2043_v55, %v186_v32  ;;  %v317_v10 = vmul.f32 %v2071_v5, %v186_v32  ;;  %v318_v29 = vmul.f32 %v2073_v6, %v186_v32  ;;  %v319_v27 = vmul.f32 %v4613_v28, %v186_v32 }
  0x8c   : > { %v201_v21 = vpop.permute.xlu1 %200  ;;  %v320_v24 = vmul.f32 %v4614_v26, %v186_v32  ;;  %v321_v17 = vmul.f32 %v4615_v18, %v186_v32  ;;  %v2232_v14 = vadd.f32 %v4616_v16, %v294_v41  ;;  %v2235_v25 = vadd.f32 %v4616_v16, %v295_v42 }
  0x8d   : > { %v2238_v7 = vadd.f32 %v4616_v16, %v296_v12  ;;  %v2241_v8 = vadd.f32 %v4616_v16, %v297_v37  ;;  %v378_v23 = vmul.f32 %v2025_v46, %v201_v21  ;;  %v379_v28 = vmul.f32 %v2027_v47, %v201_v21 }
  0x8e   : > { %4617 = vst [vmem:[#allocation3_spill] sm:$0xff] %v2232_v14  ;;  %v380_v26 = vmul.f32 %v2029_v48, %v201_v21  ;;  %v381_v32 = vmul.f32 %v2031_v49, %v201_v21  ;;  %v382_v41 = vmul.f32 %v2033_v50, %v201_v21  ;;  %v383_v14 = vmul.f32 %v2035_v51, %v201_v21 }
  0x8f   : > { %4618 = vst [vmem:[#allocation71_spill] sm:$0xff] %v2235_v25  ;;  %v384_v42 = vmul.f32 %v2037_v52, %v201_v21  ;;  %v385_v12 = vmul.f32 %v2039_v53, %v201_v21  ;;  %v387_v37 = vmul.f32 %v2043_v55, %v201_v21  ;;  %v388_v46 = vmul.f32 %v2045_v56, %v201_v21  ;;  %v4622_v25 = vld [vmem:[#allocation30_spill] sm:$0xff] }
  0x90   : > { %4619 = vst [vmem:[#allocation72_spill] sm:$0xff] %v2238_v7  ;;  %v386_v7 = vmul.f32 %v2041_v54, %v201_v21  ;;  %v389_v47 = vmul.f32 %v2047_v57, %v201_v21  ;;  %v390_v48 = vmul.f32 %v2049_v58, %v201_v21  ;;  %v391_v49 = vmul.f32 %v2051_v59, %v201_v21 }
  0x91   : > { %4620 = vst [vmem:[#allocation73_spill] sm:$0xff] %v2241_v8  ;;  %v392_v50 = vmul.f32 %v2053_v60, %v201_v21  ;;  %v393_v51 = vmul.f32 %v2055_v61, %v201_v21  ;;  %v394_v52 = vmul.f32 %v2057_v62, %v201_v21  ;;  %v395_v53 = vmul.f32 %v2059_v63, %v201_v21  ;;  %v4621_v8 = vld [vmem:[#allocation29_spill] sm:$0xff] }
  0x92   : > { %v396_v54 = vmul.f32 %v2061_v0, %v201_v21  ;;  %v397_v55 = vmul.f32 %v2063_v1, %v201_v21  ;;  %v398_v56 = vmul.f32 %v2065_v2, %v201_v21  ;;  %v399_v57 = vmul.f32 %v2067_v3, %v201_v21 }
  0x93   : > { %v400_v58 = vmul.f32 %v2069_v4, %v201_v21  ;;  %v401_v59 = vmul.f32 %v2071_v5, %v201_v21  ;;  %v402_v60 = vmul.f32 %v2073_v6, %v201_v21  ;;  %v403_v61 = vmul.f32 %v4621_v8, %v201_v21 }
  0x94   : > { %v404_v62 = vmul.f32 %v4622_v25, %v201_v21  ;;  %v405_v63 = vmul.f32 %v4615_v18, %v201_v21  ;;  %v2272_v0 = vadd.f32 %v4616_v16, %v298_v36  ;;  %v2275_v1 = vadd.f32 %v4616_v16, %v299_v39 }
  0x95   : > { %v2278_v3 = vadd.f32 %v4616_v16, %v300_v35  ;;  %v2281_v4 = vadd.f32 %v4616_v16, %v301_v40  ;;  %v2284_v6 = vadd.f32 %v4616_v16, %v302_v34  ;;  %v2287_v8 = vadd.f32 %v4616_v16, %v303_v13  ;;  %v424_v13 = vpop.permute.xlu1 %423 }
  0x96   : > { %v2290_v21 = vadd.f32 %v4616_v16, %v304_v9  ;;  %v2293_v36 = vadd.f32 %v4616_v16, %v305_v20  ;;  %v2296_v39 = vadd.f32 %v4616_v16, %v306_v38  ;;  %v2299_v35 = vadd.f32 %v4616_v16, %v307_v19 }
  0x97   : > { %4623 = vst [vmem:[#allocation74_spill] sm:$0xff] %v2287_v8  ;;  %v2302_v40 = vadd.f32 %v4616_v16, %v308_v45  ;;  %v2305_v34 = vadd.f32 %v4616_v16, %v309_v15  ;;  %v2308_v18 = vadd.f32 %v4616_v16, %v310_v44  ;;  %v2311_v9 = vadd.f32 %v4616_v16, %v311_v43 }
  0x98   : > { %4624 = vst [vmem:[#allocation75_spill] sm:$0xff] %v2290_v21  ;;  %v2314_v20 = vadd.f32 %v4616_v16, %v312_v11  ;;  %v2317_v38 = vadd.f32 %v4616_v16, %v313_v33  ;;  %v2320_v19 = vadd.f32 %v4616_v16, %v314_v22  ;;  %v2323_v45 = vadd.f32 %v4616_v16, %v315_v31 }
  0x99   : > { %4625 = vst [vmem:[#allocation76_spill] sm:$0xff] %v2293_v36  ;;  %v2326_v15 = vadd.f32 %v4616_v16, %v316_v30  ;;  %v2329_v44 = vadd.f32 %v4616_v16, %v317_v10  ;;  %v2332_v43 = vadd.f32 %v4616_v16, %v318_v29  ;;  %v2335_v11 = vadd.f32 %v4616_v16, %v319_v27  ;;  %v4698_v36 = vld [vmem:[#allocation40_spill] sm:$0xff] }
  0x9a   : > { %4626 = vst [vmem:[#allocation77_spill] sm:$0xff] %v2296_v39  ;;  %v2338_v33 = vadd.f32 %v4616_v16, %v320_v24  ;;  %v2341_v22 = vadd.f32 %v4616_v16, %v321_v17  ;;  %v2343_v31 = vadd.f32 %v424_v13, %v378_v23  ;;  %v2345_v25 = vadd.f32 %v424_v13, %v379_v28 }
  0x9b   : > { %4627 = vst [vmem:[#allocation78_spill] sm:$0xff] %v2299_v35  ;;  %v2347_v30 = vadd.f32 %v424_v13, %v380_v26  ;;  %v2349_v10 = vadd.f32 %v424_v13, %v381_v32  ;;  %v2351_v5 = vadd.f32 %v424_v13, %v382_v41  ;;  %v2353_v29 = vadd.f32 %v424_v13, %v383_v14  ;;  %v4697_v35 = vld [vmem:[#allocation39_spill] sm:$0xff] }
  0x9c   : > { %4628 = vst [vmem:[#allocation79_spill] sm:$0xff] %v2302_v40  ;;  %v2355_v27 = vadd.f32 %v424_v13, %v384_v42  ;;  %v2357_v2 = vadd.f32 %v424_v13, %v385_v12  ;;  %v2359_v24 = vadd.f32 %v424_v13, %v386_v7  ;;  %v2361_v16 = vadd.f32 %v424_v13, %v387_v37  ;;  %v4671_v37 = vld [vmem:[#allocation41_spill] sm:$0xff] }
  0x9d   : > { %4629 = vst [vmem:[#allocation80_spill] sm:$0xff] %v2305_v34  ;;  %v2363_v17 = vadd.f32 %v424_v13, %v388_v46  ;;  %v2365_v23 = vadd.f32 %v424_v13, %v389_v47  ;;  %v2367_v26 = vadd.f32 %v424_v13, %v390_v48  ;;  %v2369_v28 = vadd.f32 %v424_v13, %v391_v49  ;;  %v4696_v34 = vld [vmem:[#allocation38_spill] sm:$0xff] }
  0x9e   : > { %4630 = vst [vmem:[#allocation81_spill] sm:$0xff] %v2308_v18  ;;  %v2371_v32 = vadd.f32 %v424_v13, %v392_v50  ;;  %v2373_v14 = vadd.f32 %v424_v13, %v393_v51  ;;  %v2375_v41 = vadd.f32 %v424_v13, %v394_v52  ;;  %v2377_v42 = vadd.f32 %v424_v13, %v395_v53 }
  0x9f   : > { %4631 = vst [vmem:[#allocation82_spill] sm:$0xff] %v2311_v9  ;;  %v2379_v7 = vadd.f32 %v424_v13, %v396_v54  ;;  %v2381_v12 = vadd.f32 %v424_v13, %v397_v55  ;;  %v2383_v46 = vadd.f32 %v424_v13, %v398_v56  ;;  %v2385_v47 = vadd.f32 %v424_v13, %v399_v57  ;;  %v4670_v54 = vld [vmem:[#allocation50_spill] sm:$0xff]  ;;  %v4673_v57 = vld [vmem:[#allocation43_spill] sm:$0xff]  ;;  %v4695_v9 = vld [vmem:[#allocation37_spill] sm:$0xff] }
  0xa0   : > { %4632 = vst [vmem:[#allocation83_spill] sm:$0xff] %v2314_v20  ;;  %v2387_v48 = vadd.f32 %v424_v13, %v400_v58  ;;  %v2389_v49 = vadd.f32 %v424_v13, %v401_v59  ;;  %v2391_v50 = vadd.f32 %v424_v13, %v402_v60  ;;  %v2393_v51 = vadd.f32 %v424_v13, %v403_v61  ;;  %v4672_v56 = vld [vmem:[#allocation42_spill] sm:$0xff]  ;;  %v4674_v59 = vld [vmem:[#allocation44_spill] sm:$0xff]  ;;  %v4675_v60 = vld [vmem:[#allocation45_spill] sm:$0xff] }
  0xa1   : > { %4633 = vst [vmem:[#allocation84_spill] sm:$0xff] %v2317_v38  ;;  %v2395_v52 = vadd.f32 %v424_v13, %v404_v62  ;;  %v2397_v53 = vadd.f32 %v424_v13, %v405_v63  ;;  %v646_v55 = vmul.f32 %v4671_v37, %v4670_v54  ;;  %v648_v58 = vmul.f32 %v4673_v57, %v4670_v54  ;;  %v4676_v62 = vld [vmem:[#allocation46_spill] sm:$0xff]  ;;  %v4677_v63 = vld [vmem:[#allocation47_spill] sm:$0xff]  ;;  %v4694_v38 = vld [vmem:[#allocation36_spill] sm:$0xff] }
  0xa2   : > { %4634 = vst [vmem:[#allocation85_spill] sm:$0xff] %v2320_v19  ;;  %v650_v61 = vmul.f32 %v4675_v60, %v4670_v54  ;;  %v652_v13 = vmul.f32 %v4677_v63, %v4670_v54 }
  0xa3   : > { %4635 = vst [vmem:[#allocation86_spill] sm:$0xff] %v2323_v45  ;;  %v4693_v45 = vld [vmem:[#allocation35_spill] sm:$0xff] }
  0xa4   : > { %4636 = vst [vmem:[#allocation87_spill] sm:$0xff] %v2326_v15 }
  0xa5   : > { %4637 = vst [vmem:[#allocation88_spill] sm:$0xff] %v2329_v44  ;;  %v4692_v44 = vld [vmem:[#allocation34_spill] sm:$0xff] }
  0xa6   : > { %4638 = vst [vmem:[#allocation89_spill] sm:$0xff] %v2332_v43 }
  0xa7   : > { %4639 = vst [vmem:[#allocation90_spill] sm:$0xff] %v2335_v11  ;;  %v4691_v11 = vld [vmem:[#allocation33_spill] sm:$0xff] }
  0xa8   : > { %4640 = vst [vmem:[#allocation91_spill] sm:$0xff] %v2338_v33 }
  0xa9   : > { %4641 = vst [vmem:[#allocation92_spill] sm:$0xff] %v2341_v22  ;;  %v4690_v22 = vld [vmem:[#allocation62_spill] sm:$0xff] }
  0xaa   : > { %4642 = vst [vmem:[#allocation93_spill] sm:$0xff] %v2343_v31  ;;  %v665_v33 = vmul.f32 %v4690_v22, %v4670_v54 }
  0xab   : > { %4643 = vst [vmem:[#allocation94_spill] sm:$0xff] %v2345_v25  ;;  %v4689_v25 = vld [vmem:[#allocation61_spill] sm:$0xff] }
  0xac   : > { %4644 = vst [vmem:[#allocation95_spill] sm:$0xff] %v2347_v30  ;;  %v664_v31 = vmul.f32 %v4689_v25, %v4670_v54 }
  0xad   : > { %4645 = vst [vmem:[#allocation96_spill] sm:$0xff] %v2349_v10  ;;  %v4688_v10 = vld [vmem:[#allocation60_spill] sm:$0xff] }
  0xae   : > { %4646 = vst [vmem:[#allocation97_spill] sm:$0xff] %v2351_v5  ;;  %v663_v30 = vmul.f32 %v4688_v10, %v4670_v54 }
  0xaf   : > { %4647 = vst [vmem:[#allocation98_spill] sm:$0xff] %v2353_v29  ;;  %v4687_v29 = vld [vmem:[#allocation59_spill] sm:$0xff] }
  0xb0   : > { %4648 = vst [vmem:[#allocation99_spill] sm:$0xff] %v2355_v27  ;;  %v662_v5 = vmul.f32 %v4687_v29, %v4670_v54 }
  0xb1   : > { %4649 = vst [vmem:[#allocation100_spill] sm:$0xff] %v2357_v2  ;;  %v4686_v2 = vld [vmem:[#allocation58_spill] sm:$0xff] }
  0xb2   : > { %4650 = vst [vmem:[#allocation101_spill] sm:$0xff] %v2359_v24  ;;  %v661_v27 = vmul.f32 %v4686_v2, %v4670_v54 }
  0xb3   : > { %4651 = vst [vmem:[#allocation102_spill] sm:$0xff] %v2361_v16  ;;  %v4685_v16 = vld [vmem:[#allocation57_spill] sm:$0xff] }
  0xb4   : > { %4652 = vst [vmem:[#allocation103_spill] sm:$0xff] %v2363_v17  ;;  %v660_v24 = vmul.f32 %v4685_v16, %v4670_v54 }
  0xb5   : > { %4653 = vst [vmem:[#allocation104_spill] sm:$0xff] %v2365_v23  ;;  %v4684_v23 = vld [vmem:[#allocation56_spill] sm:$0xff] }
  0xb6   : > { %4654 = vst [vmem:[#allocation105_spill] sm:$0xff] %v2367_v26  ;;  %v659_v17 = vmul.f32 %v4684_v23, %v4670_v54 }
  0xb7   : > { %4655 = vst [vmem:[#allocation106_spill] sm:$0xff] %v2369_v28  ;;  %v4683_v28 = vld [vmem:[#allocation55_spill] sm:$0xff] }
  0xb8   : > { %4656 = vst [vmem:[#allocation107_spill] sm:$0xff] %v2371_v32  ;;  %v658_v26 = vmul.f32 %v4683_v28, %v4670_v54 }
  0xb9   : > { %4657 = vst [vmem:[#allocation108_spill] sm:$0xff] %v2373_v14  ;;  %v4682_v14 = vld [vmem:[#allocation54_spill] sm:$0xff] }
  0xba   : > { %4658 = vst [vmem:[#allocation109_spill] sm:$0xff] %v2375_v41  ;;  %v657_v32 = vmul.f32 %v4682_v14, %v4670_v54 }
  0xbb   : > { %4659 = vst [vmem:[#allocation110_spill] sm:$0xff] %v2377_v42  ;;  %v4681_v42 = vld [vmem:[#allocation53_spill] sm:$0xff] }
  0xbc   : > { %4660 = vst [vmem:[#allocation111_spill] sm:$0xff] %v2379_v7  ;;  %v656_v41 = vmul.f32 %v4681_v42, %v4670_v54 }
  0xbd   : > { %4661 = vst [vmem:[#allocation112_spill] sm:$0xff] %v2381_v12  ;;  %v4680_v12 = vld [vmem:[#allocation52_spill] sm:$0xff] }
  0xbe   : > { %4662 = vst [vmem:[#allocation113_spill] sm:$0xff] %v2383_v46  ;;  %v647_v46 = vmul.f32 %v4672_v56, %v4670_v54  ;;  %v655_v7 = vmul.f32 %v4680_v12, %v4670_v54 }
  0xbf   : > { %4663 = vst [vmem:[#allocation114_spill] sm:$0xff] %v2385_v47 }
  0xc0   : > { %4664 = vst [vmem:[#allocation115_spill] sm:$0xff] %v2387_v48  ;;  %v4679_v48 = vld [vmem:[#allocation51_spill] sm:$0xff] }
  0xc1   : > { %4665 = vst [vmem:[#allocation116_spill] sm:$0xff] %v2389_v49  ;;  %v649_v49 = vmul.f32 %v4674_v59, %v4670_v54  ;;  %v654_v47 = vmul.f32 %v4679_v48, %v4670_v54 }
  0xc2   : > { %4666 = vst [vmem:[#allocation117_spill] sm:$0xff] %v2391_v50  ;;  %v552_v50 = vpop.permute.xlu2 %551 }
  0xc3   : > { %4667 = vst [vmem:[#allocation118_spill] sm:$0xff] %v2393_v51  ;;  %v722_v43 = vmul.f32 %v4691_v11, %v552_v50  ;;  %v723_v15 = vmul.f32 %v4692_v44, %v552_v50  ;;  %v724_v19 = vmul.f32 %v4693_v45, %v552_v50  ;;  %v725_v20 = vmul.f32 %v4694_v38, %v552_v50 }
  0xc4   : > { %4668 = vst [vmem:[#allocation119_spill] sm:$0xff] %v2395_v52  ;;  %v651_v52 = vmul.f32 %v4676_v62, %v4670_v54  ;;  %v726_v18 = vmul.f32 %v4695_v9, %v552_v50  ;;  %v727_v40 = vmul.f32 %v4696_v34, %v552_v50  ;;  %v728_v39 = vmul.f32 %v4697_v35, %v552_v50 }
  0xc5   : > { %4669 = vst [vmem:[#allocation120_spill] sm:$0xff] %v2397_v53  ;;  %v4678_v53 = vld [vmem:[#allocation48_spill] sm:$0xff]  ;;  %v729_v21 = vmul.f32 %v4698_v36, %v552_v50  ;;  %v730_v8 = vmul.f32 %v4671_v37, %v552_v50  ;;  %v732_v11 = vmul.f32 %v4673_v57, %v552_v50  ;;  %v733_v44 = vmul.f32 %v4674_v59, %v552_v50 }
  0xc6   : > { %v653_v51 = vmul.f32 %v4678_v53, %v4670_v54  ;;  %v731_v54 = vmul.f32 %v4672_v56, %v552_v50  ;;  %v734_v45 = vmul.f32 %v4675_v60, %v552_v50  ;;  %v735_v38 = vmul.f32 %v4676_v62, %v552_v50  ;;  %v4707_v60 = vld [vmem:[#allocation64_spill] sm:$0xff] }
  0xc7   : > { %v736_v9 = vmul.f32 %v4677_v63, %v552_v50  ;;  %v737_v34 = vmul.f32 %v4678_v53, %v552_v50  ;;  %v738_v35 = vmul.f32 %v4679_v48, %v552_v50  ;;  %v739_v36 = vmul.f32 %v4680_v12, %v552_v50 }
  0xc8   : > { %v740_v37 = vmul.f32 %v4681_v42, %v552_v50  ;;  %v741_v56 = vmul.f32 %v4682_v14, %v552_v50  ;;  %v2460_v57 = vmul.f32 %v4683_v28, %v552_v50  ;;  %v2463_v59 = vmul.f32 %v4684_v23, %v552_v50  ;;  %v4704_v23 = vld [vmem:[#allocation3_spill] sm:$0xff] }
  0xc9   : > { %v2466_v62 = vmul.f32 %v4685_v16, %v552_v50  ;;  %v2469_v63 = vmul.f32 %v4686_v2, %v552_v50  ;;  %v2472_v48 = vmul.f32 %v4687_v29, %v552_v50  ;;  %v2475_v12 = vmul.f32 %v4688_v10, %v552_v50  ;;  %v4705_v42 = vld [vmem:[#allocation63_spill] sm:$0xff]  ;;  %v4708_v2 = vld [vmem:[#allocation72_spill] sm:$0xff]  ;;  %v4711_v10 = vld [vmem:[#allocation66_spill] sm:$0xff] }
  0xca   : > { %v2478_v14 = vmul.f32 %v4689_v25, %v552_v50  ;;  %v2481_v28 = vmul.f32 %v4690_v22, %v552_v50  ;;  %v750_v53 = vadd.f32 %v4705_v42, %v4704_v23  ;;  %v4706_v16 = vld [vmem:[#allocation71_spill] sm:$0xff]  ;;  %v4713_v50 = vld [vmem:[#allocation68_spill] sm:$0xff] }
  0xcb   : > { %4699 = vst [vmem:[#allocation50_spill] sm:$0xff] %v2466_v62  ;;  %v2487_v62 = vadd.f32 %v4707_v60, %v4706_v16  ;;  %v4712_v25 = vld [vmem:[#allocation67_spill] sm:$0xff]  ;;  %v2503_v23 = vadd.f32 %v4713_v50, %v2275_v1  ;;  %v4715_v16 = vld [vmem:[#allocation69_spill] sm:$0xff]  ;;  %v4719_v22 = vld [vmem:[#allocation76_spill] sm:$0xff] }
  0xcc   : > { %4700 = vst [vmem:[#allocation121_spill] sm:$0xff] %v2469_v63  ;;  %v4709_v63 = vld [vmem:[#allocation65_spill] sm:$0xff]  ;;  %v2507_v42 = vadd.f32 %v4715_v16, %v2278_v3  ;;  %v2523_v1 = vadd.f32 %v649_v49, %v4719_v22  ;;  %v4721_v3 = vld [vmem:[#allocation78_spill] sm:$0xff]  ;;  %v4727_v22 = vld [vmem:[#allocation83_spill] sm:$0xff]  ;;  %vm974_vm0 = vcmp.ge.f32.partialorder %v750_v53, 0.0 }
  0xcd   : > { %4701 = vst [vmem:[#allocation122_spill] sm:$0xff] %v2472_v48  ;;  %v2491_v29 = vadd.f32 %v4709_v63, %v4708_v2  ;;  %v4710_v48 = vld [vmem:[#allocation73_spill] sm:$0xff]  ;;  %v4716_v2 = vld [vmem:[#allocation70_spill] sm:$0xff]  ;;  %v2529_v16 = vadd.f32 %v651_v52, %v4721_v3  ;;  %v2544_v49 = vadd.f32 %v656_v41, %v4727_v22  ;;  %vm862_vm1 = vcmp.ge.f32.partialorder %v750_v53, 3.32 }
  0xce   : > { %4702 = vst [vmem:[#allocation123_spill] sm:$0xff] %v2475_v12  ;;  %v2495_v12 = vadd.f32 %v4711_v10, %v4710_v48  ;;  %v2511_v60 = vadd.f32 %v4716_v2, %v2281_v4  ;;  %v2514_v10 = vadd.f32 %v646_v55, %v2284_v6  ;;  %v4717_v48 = vld [vmem:[#allocation74_spill] sm:$0xff]  ;;  %v4720_v50 = vld [vmem:[#allocation77_spill] sm:$0xff]  ;;  %v4722_v4 = vld [vmem:[#allocation79_spill] sm:$0xff]  ;;  %vm975_vm6 = vcmp.ge.f32.partialorder %v2487_v62, 0.0 }
  0xcf   : > { %4703 = vst [vmem:[#allocation124_spill] sm:$0xff] %v2478_v14  ;;  %v2499_v14 = vadd.f32 %v4712_v25, %v2272_v0  ;;  %v2517_v63 = vadd.f32 %v647_v46, %v4717_v48  ;;  %v4718_v0 = vld [vmem:[#allocation75_spill] sm:$0xff]  ;;  %v2532_v2 = vadd.f32 %v652_v13, %v4722_v4  ;;  %v4723_v6 = vld [vmem:[#allocation80_spill] sm:$0xff]  ;;  %v4724_v46 = vld [vmem:[#allocation81_spill] sm:$0xff]  ;;  %vm976_vm7 = vcmp.ge.f32.partialorder %v2491_v29, 0.0 }
  0xd0   : > { %4714 = vst [vmem:[#allocation3_spill] sm:$0xff] %v2503_v23  ;;  %v2520_v25 = vadd.f32 %v648_v58, %v4718_v0  ;;  %v2526_v23 = vadd.f32 %v650_v61, %v4720_v50  ;;  %v2535_v55 = vadd.f32 %v653_v51, %v4723_v6  ;;  %v2538_v48 = vadd.f32 %v654_v47, %v4724_v46  ;;  %v4726_v58 = vld [vmem:[#allocation82_spill] sm:$0xff]  ;;  %v4729_v61 = vld [vmem:[#allocation84_spill] sm:$0xff]  ;;  %v4730_v52 = vld [vmem:[#allocation85_spill] sm:$0xff] }
  0xd1   : > { %v2541_v0 = vadd.f32 %v655_v7, %v4726_v58  ;;  %4728 = vst [vmem:[#allocation71_spill] sm:$0xff] %v2544_v49  ;;  %v2547_v50 = vadd.f32 %v657_v32, %v4729_v61  ;;  %v2551_v3 = vadd.f32 %v658_v26, %v4730_v52  ;;  %v4732_v13 = vld [vmem:[#allocation86_spill] sm:$0xff]  ;;  %v4733_v51 = vld [vmem:[#allocation87_spill] sm:$0xff]  ;;  %v4735_v47 = vld [vmem:[#allocation88_spill] sm:$0xff]  ;;  %vm977_vm8 = vcmp.ge.f32.partialorder %v2495_v12, 0.0 }
  0xd2   : > { %4725 = vst [vmem:[#allocation63_spill] sm:$0xff] %v2538_v48  ;;  %v2554_v4 = vadd.f32 %v659_v17, %v4732_v13  ;;  %v2557_v6 = vadd.f32 %v660_v24, %v4733_v51  ;;  %v2560_v46 = vadd.f32 %v661_v27, %v4735_v47  ;;  %v4736_v7 = vld [vmem:[#allocation89_spill] sm:$0xff]  ;;  %v4737_v41 = vld [vmem:[#allocation90_spill] sm:$0xff]  ;;  %v4738_v32 = vld [vmem:[#allocation91_spill] sm:$0xff]  ;;  %vm978_vm10 = vcmp.ge.f32.partialorder %v2499_v14, 0.0 }
  0xd3   : > { %4731 = vst [vmem:[#allocation64_spill] sm:$0xff] %v2551_v3  ;;  %v2563_v58 = vadd.f32 %v662_v5, %v4736_v7  ;;  %v2566_v22 = vadd.f32 %v663_v30, %v4737_v41  ;;  %v2569_v61 = vadd.f32 %v664_v31, %v4738_v32  ;;  %v4739_v26 = vld [vmem:[#allocation92_spill] sm:$0xff]  ;;  %v4740_v17 = vld [vmem:[#allocation93_spill] sm:$0xff]  ;;  %v4741_v24 = vld [vmem:[#allocation94_spill] sm:$0xff]  ;;  %vm980_vm12 = vcmp.ge.f32.partialorder %v2507_v42, 0.0 }
  0xd4   : > { %4734 = vst [vmem:[#allocation72_spill] sm:$0xff] %v2557_v6  ;;  %v2572_v52 = vadd.f32 %v665_v33, %v4739_v26  ;;  %v2575_v13 = vadd.f32 %v722_v43, %v4740_v17  ;;  %v2578_v51 = vadd.f32 %v723_v15, %v4741_v24  ;;  %v4742_v27 = vld [vmem:[#allocation95_spill] sm:$0xff]  ;;  %v4743_v5 = vld [vmem:[#allocation96_spill] sm:$0xff]  ;;  %v4745_v31 = vld [vmem:[#allocation97_spill] sm:$0xff]  ;;  %v4504_v24 = vmov 0.01  }
  0xd5   : > { %v2581_v47 = vadd.f32 %v724_v19, %v4742_v27  ;;  %v2586_v30 = vadd.f32 %v725_v20, %v4743_v5  ;;  %v2589_v7 = vadd.f32 %v726_v18, %v4745_v31  ;;  %v4747_v41 = vld [vmem:[#allocation98_spill] sm:$0xff]  ;;  %v4749_v32 = vld [vmem:[#allocation99_spill] sm:$0xff]  ;;  %v4751_v26 = vld [vmem:[#allocation100_spill] sm:$0xff]  ;;  %v1086_v20 = vsel %vm974_vm0, 1.0, %v4504_v24 }
  0xd6   : > { %v2592_v33 = vadd.f32 %v727_v40, %v4747_v41  ;;  %v2595_v43 = vadd.f32 %v728_v39, %v4749_v32  ;;  %v2598_v15 = vadd.f32 %v729_v21, %v4751_v26  ;;  %v4753_v17 = vld [vmem:[#allocation101_spill] sm:$0xff]  ;;  %v4755_v27 = vld [vmem:[#allocation102_spill] sm:$0xff]  ;;  %v4757_v18 = vld [vmem:[#allocation103_spill] sm:$0xff]  ;;  %vm989_vm13 = vcmp.ge.f32.partialorder %v2535_v55, 0.0 }
  0xd7   : > { %4744 = vst [vmem:[#allocation65_spill] sm:$0xff] %v2586_v30  ;;  %v2601_v19 = vadd.f32 %v730_v8, %v4753_v17  ;;  %v2605_v5 = vadd.f32 %v731_v54, %v4755_v27  ;;  %v2608_v31 = vadd.f32 %v732_v11, %v4757_v18  ;;  %v4759_v40 = vld [vmem:[#allocation104_spill] sm:$0xff]  ;;  %v4761_v39 = vld [vmem:[#allocation105_spill] sm:$0xff]  ;;  %v4763_v21 = vld [vmem:[#allocation106_spill] sm:$0xff]  ;;  %vm990_vm15 = vcmp.ge.f32.partialorder %v2538_v48, 0.0 }
  0xd8   : > { %4746 = vst [vmem:[#allocation73_spill] sm:$0xff] %v2589_v7  ;;  %v2611_v41 = vadd.f32 %v733_v44, %v4759_v40  ;;  %v2614_v32 = vadd.f32 %v734_v45, %v4761_v39  ;;  %v2617_v26 = vadd.f32 %v735_v38, %v4763_v21  ;;  %v4765_v8 = vld [vmem:[#allocation107_spill] sm:$0xff]  ;;  %v4767_v54 = vld [vmem:[#allocation109_spill] sm:$0xff]  ;;  %v4768_v11 = vld [vmem:[#allocation110_spill] sm:$0xff]  ;;  %v1198_v38 = vsel %vm862_vm1, -0.00674, %v1086_v20 }
  0xd9   : > { %4748 = vst [vmem:[#allocation66_spill] sm:$0xff] %v2592_v33  ;;  %v2620_v17 = vadd.f32 %v736_v9, %v4765_v8  ;;  %v2626_v27 = vadd.f32 %v738_v35, %v4767_v54  ;;  %v2629_v18 = vadd.f32 %v739_v36, %v4768_v11  ;;  %v4769_v44 = vld [vmem:[#allocation111_spill] sm:$0xff]  ;;  %v4770_v45 = vld [vmem:[#allocation112_spill] sm:$0xff]  ;;  %v4772_v21 = vld [vmem:[#allocation113_spill] sm:$0xff]  ;;  %v1310_v54 = vmul.f32 %v1198_v38, %v750_v53 }
  0xda   : > { %4750 = vst [vmem:[#allocation67_spill] sm:$0xff] %v2595_v43  ;;  %v2632_v40 = vadd.f32 %v740_v37, %v4769_v44  ;;  %v2635_v39 = vadd.f32 %v741_v56, %v4770_v45  ;;  %v2639_v9 = vadd.f32 %v2460_v57, %v4772_v21  ;;  %v4776_v35 = vld [vmem:[#allocation115_spill] sm:$0xff]  ;;  %v4777_v8 = vld [vmem:[#allocation50_spill] sm:$0xff]  ;;  %v4779_v11 = vld [vmem:[#allocation116_spill] sm:$0xff]  ;;  %vm994_vm4 = vcmp.ge.f32.partialorder %v2551_v3, 0.0 }
  0xdb   : > { %4752 = vst [vmem:[#allocation68_spill] sm:$0xff] %v2598_v15  ;;  %v2647_v36 = vadd.f32 %v4777_v8, %v4776_v35  ;;  %v4780_v37 = vld [vmem:[#allocation121_spill] sm:$0xff]  ;;  %v4783_v45 = vld [vmem:[#allocation122_spill] sm:$0xff]  ;;  %v4786_v57 = vld [vmem:[#allocation123_spill] sm:$0xff]  ;;  %v4794_v53 = vmov 0.01  }
  0xdc   : > { %4754 = vst [vmem:[#allocation69_spill] sm:$0xff] %v2601_v19  ;;  %v4766_v19 = vld [vmem:[#allocation108_spill] sm:$0xff]  ;;  %v2651_v44 = vadd.f32 %v4780_v37, %v4779_v11  ;;  %v4782_v56 = vld [vmem:[#allocation117_spill] sm:$0xff]  ;;  %vm997_vm0 = vcmp.ge.f32.partialorder %v2560_v46, 0.0  ;;  %v1088_v38 = vsel %vm976_vm7, 1.0, %v4794_v53  ;;  %vm1000_vm2 = vcmp.ge.f32.partialorder %v2569_v61, 0.0 }
  0xdd   : > { %4756 = vst [vmem:[#allocation70_spill] sm:$0xff] %v2605_v5  ;;  %v2623_v24 = vadd.f32 %v737_v34, %v4766_v19  ;;  %v4774_v34 = vld [vmem:[#allocation114_spill] sm:$0xff]  ;;  %v2655_v20 = vadd.f32 %v4783_v45, %v4782_v56  ;;  %vm873_vm9 = vcmp.ge.f32.partialorder %v2523_v1, 3.32  ;;  %vm1001_vm3 = vcmp.ge.f32.partialorder %v2572_v52, 0.0 }
  0xde   : > { %4758 = vst [vmem:[#allocation74_spill] sm:$0xff] %v2608_v31  ;;  %v2643_v19 = vadd.f32 %v2463_v59, %v4774_v34  ;;  %v4789_v59 = vld [vmem:[#allocation124_spill] sm:$0xff]  ;;  %vm1059_vm5 = vcmp.ge.f32.partialorder %v2578_v51, 0.0  ;;  %vm4795_vm7 = vcmp.ge.f32.partialorder %v2487_v62, 3.32  ;;  %vm1065_vm1 = vcmp.ge.f32.partialorder %v2598_v15, 0.0 }
  0xdf   : > { %4760 = vst [vmem:[#allocation75_spill] sm:$0xff] %v2611_v41  ;;  %vm1068_vm14 = vcmp.ge.f32.partialorder %v2608_v31, 0.0 }
  0xe0   : > { %4762 = vst [vmem:[#allocation76_spill] sm:$0xff] %v2614_v32 }
  0xe1   : > { %4764 = vst [vmem:[#allocation77_spill] sm:$0xff] %v2617_v26 }
  0xe2   : > { %4771 = vst [vmem:[#allocation78_spill] sm:$0xff] %v2635_v39  ;;  %v4785_v39 = vld [vmem:[#allocation118_spill] sm:$0xff] }
  0xe3   : > { %4773 = vst [vmem:[#allocation79_spill] sm:$0xff] %v2639_v9  ;;  %v2659_v21 = vadd.f32 %v4786_v57, %v4785_v39  ;;  %v4788_v9 = vld [vmem:[#allocation119_spill] sm:$0xff]  ;;  %v1087_v39 = vsel %vm975_vm6, 1.0, %v4794_v53  ;;  %vm1058_vm6 = vcmp.ge.f32.partialorder %v2575_v13, 0.0 }
  0xe4   : > { %4775 = vst [vmem:[#allocation80_spill] sm:$0xff] %v2643_v19  ;;  %v2663_v34 = vadd.f32 %v4789_v59, %v4788_v9  ;;  %v4791_v19 = vld [vmem:[#allocation120_spill] sm:$0xff]  ;;  %v1089_v9 = vsel %vm977_vm8, 1.0, %v4794_v53  ;;  %v1199_v11 = vsel %vm4795_vm7, -0.00674, %v1087_v39  ;;  %vm1067_vm8 = vcmp.ge.f32.partialorder %v2605_v5, 0.0 }
  0xe5   : > { %4778 = vst [vmem:[#allocation81_spill] sm:$0xff] %v2647_v36  ;;  %v2667_v35 = vadd.f32 %v2481_v28, %v4791_v19  ;;  %v4793_v28 = vld [vmem:[#allocation3_spill] sm:$0xff]  ;;  %v1090_v19 = vsel %vm978_vm10, 1.0, %v4794_v53  ;;  %vm4796_vm10 = vcmp.ge.f32.partialorder %v2511_v60, 0.0  ;;  %vm4799_vm7 = vcmp.ge.f32.partialorder %v2491_v29, 3.32 }
  0xe6   : > { %4781 = vst [vmem:[#allocation82_spill] sm:$0xff] %v2651_v44  ;;  %vm979_vm11 = vcmp.ge.f32.partialorder %v4793_v28, 0.0  ;;  %v1093_v37 = vsel %vm4796_vm10, 1.0, %v4794_v53  ;;  %v1200_v57 = vsel %vm4799_vm7, -0.00674, %v1088_v38  ;;  %vm4800_vm10 = vcmp.ge.f32.partialorder %v2520_v25, 0.0 }
  0xe7   : > { %4784 = vst [vmem:[#allocation83_spill] sm:$0xff] %v2655_v20  ;;  %v1091_v8 = vsel %vm979_vm11, 1.0, %v4794_v53  ;;  %vm4797_vm11 = vcmp.ge.f32.partialorder %v2514_v10, 0.0  ;;  %v1096_v59 = vsel %vm4800_vm10, 1.0, %v4794_v53  ;;  %vm4803_vm7 = vcmp.ge.f32.partialorder %v2495_v12, 3.32 }
  0xe8   : > { %4787 = vst [vmem:[#allocation84_spill] sm:$0xff] %v2659_v21  ;;  %v1094_v56 = vsel %vm4797_vm11, 1.0, %v4794_v53  ;;  %vm4801_vm11 = vcmp.ge.f32.partialorder %v2523_v1, 0.0  ;;  %v1201_v38 = vsel %vm4803_vm7, -0.00674, %v1089_v9  ;;  %vm4805_vm10 = vcmp.ge.f32.partialorder %v2529_v16, 0.0 }
  0xe9   : > { %4790 = vst [vmem:[#allocation85_spill] sm:$0xff] %v2663_v34  ;;  %v1097_v39 = vsel %vm4801_vm11, 1.0, %v4794_v53  ;;  %v2771_v21 = vsel %vm4805_vm10, 1.0, %v4794_v53  ;;  %vm4806_vm11 = vcmp.ge.f32.partialorder %v2532_v2, 0.0  ;;  %v1311_v9 = vmul.f32 %v1199_v11, %v2487_v62 }
  0xea   : > { %4792 = vst [vmem:[#allocation86_spill] sm:$0xff] %v2667_v35  ;;  %v2776_v20 = vsel %vm4806_vm11, 1.0, %v4794_v53  ;;  %v2787_v36 = vsel %vm989_vm13, 1.0, %v4794_v53  ;;  %v2792_v34 = vsel %vm990_vm15, 1.0, %v4794_v53  ;;  %vm4808_vm10 = vcmp.ge.f32.partialorder %v4793_v28, 3.32 }
  0xeb   : > { %1422 = vst [vmem:[%s2673_s22] sm:$0xff] %v1310_v54  ;;  %v1092_v54 = vsel %vm980_vm12, 1.0, %v4794_v53  ;;  %vm4798_vm12 = vcmp.ge.f32.partialorder %v2517_v63, 0.0  ;;  %v1312_v62 = vmul.f32 %v1200_v57, %v2491_v29  ;;  %vm4809_vm13 = vcmp.ge.f32.partialorder %v2541_v0, 0.0 }
  0xec   : > { %v1095_v45 = vsel %vm4798_vm12, 1.0, %v4794_v53  ;;  %vm4802_vm12 = vcmp.ge.f32.partialorder %v2526_v23, 0.0  ;;  %v2803_v11 = vsel %vm4809_vm13, 1.0, %v4794_v53  ;;  %vm4810_vm15 = vcmp.ge.f32.partialorder %v2544_v49, 0.0  ;;  %1423 = vst [vmem:[%s2673_s22 + $0x8] sm:$0xff] %v1311_v9 }
  0xed   : > { %v2761_v35 = vsel %vm4802_vm12, 1.0, %v4794_v53  ;;  %vm4807_vm12 = vcmp.ge.f32.partialorder %v2499_v14, 3.32  ;;  %v2808_v48 = vsel %vm4810_vm15, 1.0, %v4794_v53  ;;  %v1313_v29 = vmul.f32 %v1201_v38, %v2495_v12  ;;  %1424 = vst [vmem:[%s2673_s22 + $0x10] sm:$0xff] %v1312_v62 }
  0xee   : > { %v1202_v44 = vsel %vm4807_vm12, -0.00674, %v1090_v19  ;;  %v1203_v19 = vsel %vm4808_vm10, -0.00674, %v1091_v8  ;;  %vm4811_vm10 = vcmp.ge.f32.partialorder %v2507_v42, 3.32 }
  0xef   : > { %v1204_v8 = vsel %vm4811_vm10, -0.00674, %v1092_v54  ;;  %vm1070_vm7 = vcmp.ge.f32.partialorder %v2614_v32, 0.0  ;;  %vm4812_vm13 = vcmp.ge.f32.partialorder %v2547_v50, 0.0  ;;  %v2824_v49 = vsel %vm994_vm4, 1.0, %v4794_v53  ;;  %1425 = vst [vmem:[%s2673_s22 + $0x18] sm:$0xff] %v1313_v29 }
  0xf0   : > { %v2819_v57 = vsel %vm4812_vm13, 1.0, %v4794_v53  ;;  %vm4813_vm15 = vcmp.ge.f32.partialorder %v2511_v60, 3.32  ;;  %v1314_v12 = vmul.f32 %v1202_v44, %v2499_v14  ;;  %vm4814_vm13 = vcmp.ge.f32.partialorder %v2554_v4, 0.0 }
  0xf1   : > { %v1205_v54 = vsel %vm4813_vm15, -0.00674, %v1093_v37  ;;  %v2835_v38 = vsel %vm4814_vm13, 1.0, %v4794_v53  ;;  %vm4815_vm4 = vcmp.ge.f32.partialorder %v2557_v6, 0.0  ;;  %vm4816_vm15 = vcmp.ge.f32.partialorder %v2514_v10, 3.32 }
  0xf2   : > { %v2840_v3 = vsel %vm4815_vm4, 1.0, %v4794_v53  ;;  %v1206_v14 = vsel %vm4816_vm15, -0.00674, %v1094_v56  ;;  %v1315_v44 = vmul.f32 %v1203_v19, %v4793_v28  ;;  %vm1072_vm12 = vcmp.ge.f32.partialorder %v2620_v17, 0.0  ;;  %1426 = vst [vmem:[%s2673_s22 + $0x20] sm:$0xff] %v1314_v12 }
  0xf3   : > { %v2852_v37 = vsel %vm997_vm0, 1.0, %v4794_v53  ;;  %vm4817_vm13 = vcmp.ge.f32.partialorder %v2563_v58, 0.0  ;;  %vm4818_vm4 = vcmp.ge.f32.partialorder %v2517_v63, 3.32  ;;  %v1316_v56 = vmul.f32 %v1204_v8, %v2507_v42 }
  0xf4   : > { %v2857_v6 = vsel %vm4817_vm13, 1.0, %v4794_v53  ;;  %v1207_v28 = vsel %vm4818_vm4, -0.00674, %v1095_v45  ;;  %vm1073_vm11 = vcmp.ge.f32.partialorder %v2623_v24, 0.0  ;;  %vm4819_vm0 = vcmp.ge.f32.partialorder %v2566_v22, 0.0  ;;  %1427 = vst [vmem:[%s2673_s22 + $0x28] sm:$0xff] %v1315_v44 }
  0xf5   : > { %v2869_v9 = vsel %vm4819_vm0, 1.0, %v4794_v53  ;;  %v2874_v19 = vsel %vm1000_vm2, 1.0, %v4794_v53  ;;  %vm4820_vm13 = vcmp.ge.f32.partialorder %v2520_v25, 3.32  ;;  %v1317_v45 = vmul.f32 %v1205_v54, %v2511_v60  ;;  %1428 = vst [vmem:[%s2673_s22 + $0x30] sm:$0xff] %v1316_v56  ;;  %v4826_v44 = vld [vmem:[#allocation78_spill] sm:$0xff] }
  0xf6   : > { %v1208_v42 = vsel %vm4820_vm13, -0.00674, %v1096_v59  ;;  %vm889_vm4 = vcmp.ge.f32.partialorder %v2572_v52, 3.32  ;;  %vm946_vm10 = vcmp.ge.f32.partialorder %v2575_v13, 3.32  ;;  %v1318_v59 = vmul.f32 %v1206_v14, %v2514_v10 }
  0xf7   : > { %vm1074_vm15 = vcmp.ge.f32.partialorder %v2626_v27, 0.0  ;;  %v2886_v62 = vsel %vm1001_vm3, 1.0, %v4794_v53  ;;  %v2891_v8 = vsel %vm1058_vm6, 1.0, %v4794_v53  ;;  %v1209_v60 = vsel %vm873_vm9, -0.00674, %v1097_v39  ;;  %1429 = vst [vmem:[%s2673_s22 + $0x38] sm:$0xff] %v1317_v45 }
  0xf8   : > { %vm1075_vm13 = vcmp.ge.f32.partialorder %v2629_v18, 0.0  ;;  %v2903_v29 = vsel %vm1059_vm5, 1.0, %v4794_v53  ;;  %vm4821_vm3 = vcmp.ge.f32.partialorder %v2581_v47, 0.0  ;;  %vm4822_vm9 = vcmp.ge.f32.partialorder %v2526_v23, 3.32  ;;  %v4831_v56 = vld [vmem:[#allocation69_spill] sm:$0xff] }
  0xf9   : > { %v2908_v54 = vsel %vm4821_vm3, 1.0, %v4794_v53  ;;  %v1210_v10 = vsel %vm4822_vm9, -0.00674, %v2761_v35  ;;  %v1319_v39 = vmul.f32 %v1207_v28, %v2517_v63  ;;  %vm4823_vm2 = vcmp.ge.f32.partialorder %v2586_v30, 0.0  ;;  %1430 = vst [vmem:[%s2673_s22 + $0x40] sm:$0xff] %v1318_v59  ;;  %v4835_v45 = vld [vmem:[#allocation80_spill] sm:$0xff] }
  0xfa   : > { %v2921_v12 = vsel %vm4823_vm2, 1.0, %v4794_v53  ;;  %vm4824_vm3 = vcmp.ge.f32.partialorder %v2589_v7, 0.0  ;;  %vm4825_vm9 = vcmp.ge.f32.partialorder %v2529_v16, 3.32  ;;  %v1320_v35 = vmul.f32 %v1208_v42, %v2520_v25  ;;  %v4832_v42 = vld [vmem:[#allocation79_spill] sm:$0xff] }
  0xfb   : > { %v2926_v14 = vsel %vm4824_vm3, 1.0, %v4794_v53  ;;  %v1211_v63 = vsel %vm4825_vm9, -0.00674, %v2771_v21  ;;  %vm1077_vm2 = vcmp.ge.f32.partialorder %v4826_v44, 0.0  ;;  %vm4827_vm5 = vcmp.ge.f32.partialorder %v2592_v33, 0.0  ;;  %1431 = vst [vmem:[%s2673_s22 + $0x48] sm:$0xff] %v1319_v39 }
  0xfc   : > { %v2939_v28 = vsel %vm4827_vm5, 1.0, %v4794_v53  ;;  %vm4828_vm3 = vcmp.ge.f32.partialorder %v2595_v43, 0.0  ;;  %vm4830_vm9 = vcmp.ge.f32.partialorder %v2532_v2, 3.32  ;;  %v1321_v21 = vmul.f32 %v1209_v60, %v2523_v1  ;;  %1432 = vst [vmem:[%s2673_s22 + $0x50] sm:$0xff] %v1320_v35 }
  0xfd   : > { %v2944_v7 = vsel %vm4828_vm3, 1.0, %v4794_v53  ;;  %v1212_v25 = vsel %vm4830_vm9, -0.00674, %v2776_v20  ;;  %vm1078_vm5 = vcmp.ge.f32.partialorder %v4832_v42, 0.0  ;;  %v2957_v43 = vsel %vm1065_vm1, 1.0, %v4794_v53 }
  0xfe   : > { %4829 = vst [vmem:[#allocation87_spill] sm:$0xff] %v2944_v7  ;;  %vm4833_vm3 = vcmp.ge.f32.partialorder %v4831_v56, 0.0  ;;  %vm4834_vm9 = vcmp.ge.f32.partialorder %v2535_v55, 3.32  ;;  %v1322_v20 = vmul.f32 %v1210_v10, %v2526_v23  ;;  %vm1079_vm1 = vcmp.ge.f32.partialorder %v4835_v45, 0.0  ;;  %v4837_v23 = vld [vmem:[#allocation63_spill] sm:$0xff] }
  0xff   : > { %v2962_v7 = vsel %vm4833_vm3, 1.0, %v4794_v53  ;;  %v1213_v1 = vsel %vm4834_vm9, -0.00674, %v2787_v36  ;;  %v2975_v60 = vsel %vm1067_vm8, 1.0, %v4794_v53  ;;  %v2980_v56 = vsel %vm1068_vm14, 1.0, %v4794_v53  ;;  %v4839_v10 = vld [vmem:[#allocation81_spill] sm:$0xff] }
 0x100   : > { %4836 = vst [vmem:[#allocation88_spill] sm:$0xff] %v2980_v56  ;;  %vm4838_vm3 = vcmp.ge.f32.partialorder %v4837_v23, 3.32  ;;  %v1323_v59 = vmul.f32 %v1211_v63, %v2529_v16  ;;  %vm4840_vm0 = vcmp.ge.f32.partialorder %v2611_v41, 0.0  ;;  %vm4841_vm14 = vcmp.ge.f32.partialorder %v2541_v0, 3.32 }
 0x101   : > { %v1214_v36 = vsel %vm4838_vm3, -0.00674, %v2792_v34  ;;  %v2993_v31 = vsel %vm4840_vm0, 1.0, %v4794_v53  ;;  %v1215_v56 = vsel %vm4841_vm14, -0.00674, %v2803_v11  ;;  %v4842_v34 = vld [vmem:[#allocation71_spill] sm:$0xff]  ;;  %v1324_v39 = vmul.f32 %v1212_v25, %v2532_v2 }
 0x102   : > { %vm4843_vm3 = vcmp.ge.f32.partialorder %v4842_v34, 3.32  ;;  %v4844_v63 = vld [vmem:[#allocation82_spill] sm:$0xff]  ;;  %v3009_v41 = vsel %vm1070_vm7, 1.0, %v4794_v53  ;;  %vm4845_vm0 = vcmp.ge.f32.partialorder %v2547_v50, 3.32  ;;  %v1325_v35 = vmul.f32 %v1213_v1, %v2535_v55 }
 0x103   : > { %v1216_v16 = vsel %vm4843_vm3, -0.00674, %v2808_v48  ;;  %vm1081_vm8 = vcmp.ge.f32.partialorder %v4844_v63, 0.0  ;;  %v1217_v11 = vsel %vm4845_vm0, -0.00674, %v2819_v57  ;;  %v4846_v48 = vld [vmem:[#allocation64_spill] sm:$0xff] }
 0x104   : > { %vm4847_vm14 = vcmp.ge.f32.partialorder %v4846_v48, 3.32  ;;  %1433 = vst [vmem:[%s2673_s22 + $0x58] sm:$0xff] %v1321_v21  ;;  %v4848_v25 = vld [vmem:[#allocation83_spill] sm:$0xff]  ;;  %vm4849_vm7 = vcmp.ge.f32.partialorder %v2617_v26, 0.0  ;;  %v1326_v21 = vmul.f32 %v1214_v36, %v4837_v23  ;;  %v4853_v1 = vld [vmem:[#allocation84_spill] sm:$0xff] }
 0x105   : > { %v1218_v2 = vsel %vm4847_vm14, -0.00674, %v2824_v49  ;;  %v3025_v32 = vsel %vm4849_vm7, 1.0, %v4794_v53  ;;  %vm4850_vm0 = vcmp.ge.f32.partialorder %v2554_v4, 3.32  ;;  %v4851_v49 = vld [vmem:[#allocation72_spill] sm:$0xff] }
 0x106   : > { %v1219_v57 = vsel %vm4850_vm0, -0.00674, %v2835_v38  ;;  %vm4852_vm14 = vcmp.ge.f32.partialorder %v4851_v49, 3.32  ;;  %1434 = vst [vmem:[%s2673_s22 + $0x60] sm:$0xff] %v1322_v20  ;;  %vm1083_vm6 = vcmp.ge.f32.partialorder %v4853_v1, 0.0  ;;  %v1327_v20 = vmul.f32 %v1215_v56, %v2541_v0 }
 0x107   : > { %v1220_v55 = vsel %vm4852_vm14, -0.00674, %v2840_v3  ;;  %v1184_v26 = vsel %vm1072_vm12, 1.0, %v4794_v53  ;;  %vm4854_vm7 = vcmp.ge.f32.partialorder %v2560_v46, 3.32  ;;  %1435 = vst [vmem:[%s2673_s22 + $0x68] sm:$0xff] %v1323_v59 }
 0x108   : > { %v1221_v38 = vsel %vm4854_vm7, -0.00674, %v2852_v37  ;;  %vm4855_vm0 = vcmp.ge.f32.partialorder %v2563_v58, 3.32  ;;  %v4856_v23 = vld [vmem:[#allocation85_spill] sm:$0xff]  ;;  %v1185_v36 = vsel %vm1073_vm11, 1.0, %v4794_v53 }
 0x109   : > { %v1222_v3 = vsel %vm4855_vm0, -0.00674, %v2857_v6  ;;  %vm1084_vm9 = vcmp.ge.f32.partialorder %v4856_v23, 0.0  ;;  %vm4857_vm12 = vcmp.ge.f32.partialorder %v2566_v22, 3.32  ;;  %v1328_v6 = vmul.f32 %v1216_v16, %v4842_v34  ;;  %1436 = vst [vmem:[%s2673_s22 + $0x70] sm:$0xff] %v1324_v39 }
 0x10a   : > { %v1223_v37 = vsel %vm4857_vm12, -0.00674, %v2869_v9  ;;  %vm4858_vm7 = vcmp.ge.f32.partialorder %v2569_v61, 3.32  ;;  %vm967_vm0 = vcmp.ge.f32.partialorder %v4835_v45, 3.32  ;;  %v1329_v34 = vmul.f32 %v1217_v11, %v2547_v50 }
 0x10b   : > { %v1224_v0 = vsel %vm4858_vm7, -0.00674, %v2874_v19  ;;  %vm968_vm3 = vcmp.ge.f32.partialorder %v4839_v10, 3.32  ;;  %v4859_v56 = vld [vmem:[#allocation86_spill] sm:$0xff]  ;;  %v1186_v59 = vsel %vm1074_vm15, 1.0, %v4794_v53  ;;  %v1330_v50 = vmul.f32 %v1218_v2, %v4846_v48 }
 0x10c   : > { %vm1085_vm14 = vcmp.ge.f32.partialorder %v4859_v56, 0.0  ;;  %v1225_v9 = vsel %vm889_vm4, -0.00674, %v2886_v62  ;;  %v1282_v19 = vsel %vm946_vm10, -0.00674, %v2891_v8  ;;  %1437 = vst [vmem:[%s2673_s22 + $0x78] sm:$0xff] %v1325_v35  ;;  %v1331_v48 = vmul.f32 %v1219_v57, %v2554_v4 }
 0x10d   : > { %vm969_vm11 = vcmp.ge.f32.partialorder %v4844_v63, 3.32  ;;  %v1187_v16 = vsel %vm1075_vm13, 1.0, %v4794_v53  ;;  %vm4860_vm15 = vcmp.ge.f32.partialorder %v2578_v51, 3.32  ;;  %1438 = vst [vmem:[%s2673_s22 + $0x80] sm:$0xff] %v1326_v21 }
 0x10e   : > { %v1283_v62 = vsel %vm4860_vm15, -0.00674, %v2903_v29  ;;  %vm4861_vm4 = vcmp.ge.f32.partialorder %v2581_v47, 3.32  ;;  %vm971_vm10 = vcmp.ge.f32.partialorder %v4853_v1, 3.32 }
 0x10f   : > { %v1284_v8 = vsel %vm4861_vm4, -0.00674, %v2908_v54  ;;  %vm972_vm7 = vcmp.ge.f32.partialorder %v4856_v23, 3.32  ;;  %vm4862_vm12 = vcmp.ge.f32.partialorder %v2632_v40, 0.0  ;;  %v4864_v11 = vld [vmem:[#allocation73_spill] sm:$0xff] }
 0x110   : > { %v1188_v39 = vsel %vm4862_vm12, 1.0, %v4794_v53  ;;  %vm4863_vm13 = vcmp.ge.f32.partialorder %v2586_v30, 3.32  ;;  %vm4865_vm15 = vcmp.ge.f32.partialorder %v4864_v11, 3.32  ;;  %1439 = vst [vmem:[%s2673_s22 + $0x88] sm:$0xff] %v1327_v20 }
 0x111   : > { %v1285_v29 = vsel %vm4863_vm13, -0.00674, %v2921_v12  ;;  %v1286_v54 = vsel %vm4865_vm15, -0.00674, %v2926_v14  ;;  %vm973_vm4 = vcmp.ge.f32.partialorder %v4859_v56, 3.32  ;;  %v1332_v14 = vmul.f32 %v1220_v55, %v4851_v49 }
 0x112   : > { %v1189_v2 = vsel %vm1077_vm2, 1.0, %v4794_v53  ;;  %vm4866_vm12 = vcmp.ge.f32.partialorder %v2592_v33, 3.32  ;;  %v4867_v21 = vld [vmem:[#allocation87_spill] sm:$0xff]  ;;  %1440 = vst [vmem:[%s2673_s22 + $0x90] sm:$0xff] %v1328_v6  ;;  %v1190_v4 = vsel %vm1078_vm5, 1.0, %v4794_v53  ;;  %v1333_v33 = vmul.f32 %v1221_v38, %v2560_v46 }
 0x113   : > { %v1287_v35 = vsel %vm4866_vm12, -0.00674, %v2939_v28  ;;  %v4868_v12 = vld [vmem:[#allocation67_spill] sm:$0xff]  ;;  %vm4870_vm15 = vcmp.ge.f32.partialorder %v2598_v15, 3.32  ;;  %v4871_v20 = vld [vmem:[#allocation69_spill] sm:$0xff]  ;;  %v1334_v15 = vmul.f32 %v1222_v3, %v2563_v58 }
 0x114   : > { %vm4869_vm13 = vcmp.ge.f32.partialorder %v4868_v12, 3.32  ;;  %v1289_v57 = vsel %vm4870_vm15, -0.00674, %v2957_v43  ;;  %vm4872_vm2 = vcmp.ge.f32.partialorder %v4871_v20, 3.32 }
 0x115   : > { %v1288_v30 = vsel %vm4869_vm13, -0.00674, %v4867_v21  ;;  %v1290_v28 = vsel %vm4872_vm2, -0.00674, %v2962_v7  ;;  %1441 = vst [vmem:[%s2673_s22 + $0x98] sm:$0xff] %v1329_v34  ;;  %v1191_v49 = vsel %vm1079_vm1, 1.0, %v4794_v53 }
 0x116   : > { %vm4873_vm12 = vcmp.ge.f32.partialorder %v2605_v5, 3.32  ;;  %v4874_v6 = vld [vmem:[#allocation88_spill] sm:$0xff]  ;;  %v4875_v21 = vld [vmem:[#allocation74_spill] sm:$0xff]  ;;  %1442 = vst [vmem:[%s2673_s22 + $0xa0] sm:$0xff] %v1330_v50  ;;  %vm4877_vm13 = vcmp.ge.f32.partialorder %v4839_v10, 0.0  ;;  %v1335_v5 = vmul.f32 %v1223_v37, %v2566_v22 }
 0x117   : > { %v1291_v55 = vsel %vm4873_vm12, -0.00674, %v2975_v60  ;;  %vm4876_vm5 = vcmp.ge.f32.partialorder %v4875_v21, 3.32  ;;  %v1192_v46 = vsel %vm4877_vm13, 1.0, %v4794_v53  ;;  %v4878_v7 = vld [vmem:[#allocation75_spill] sm:$0xff] }
 0x118   : > { %v1292_v43 = vsel %vm4876_vm5, -0.00674, %v4874_v6  ;;  %vm4879_vm15 = vcmp.ge.f32.partialorder %v4878_v7, 3.32  ;;  %v4880_v34 = vld [vmem:[#allocation76_spill] sm:$0xff]  ;;  %1443 = vst [vmem:[%s2673_s22 + $0xa8] sm:$0xff] %v1331_v48  ;;  %v1337_v48 = vmul.f32 %v1225_v9, %v2572_v52 }
 0x119   : > { %v1293_v38 = vsel %vm4879_vm15, -0.00674, %v2993_v31  ;;  %vm4881_vm1 = vcmp.ge.f32.partialorder %v4880_v34, 3.32  ;;  %v1193_v58 = vsel %vm1081_vm8, 1.0, %v4794_v53  ;;  %v4882_v3 = vld [vmem:[#allocation77_spill] sm:$0xff]  ;;  %v1336_v31 = vmul.f32 %v1224_v0, %v2569_v61 }
 0x11a   : > { %v1294_v60 = vsel %vm4881_vm1, -0.00674, %v3009_v41  ;;  %vm4883_vm2 = vcmp.ge.f32.partialorder %v4882_v3, 3.32  ;;  %vm4884_vm12 = vcmp.ge.f32.partialorder %v2620_v17, 3.32 }
 0x11b   : > { %v1295_v50 = vsel %vm4883_vm2, -0.00674, %v3025_v32  ;;  %v1296_v6 = vsel %vm4884_vm12, -0.00674, %v1184_v26  ;;  %1444 = vst [vmem:[%s2673_s22 + $0xb0] sm:$0xff] %v1332_v14  ;;  %vm4885_vm5 = vcmp.ge.f32.partialorder %v4848_v25, 0.0  ;;  %v1398_v14 = vmul.f32 %v1286_v54, %v4864_v11 }
 0x11c   : > { %v1194_v22 = vsel %vm4885_vm5, 1.0, %v4794_v53  ;;  %vm4886_vm13 = vcmp.ge.f32.partialorder %v2623_v24, 3.32  ;;  %vm4887_vm8 = vcmp.ge.f32.partialorder %v2626_v27, 3.32  ;;  %1445 = vst [vmem:[%s2673_s22 + $0xb8] sm:$0xff] %v1333_v33  ;;  %v1404_v11 = vmul.f32 %v1292_v43, %v4875_v21 }
 0x11d   : > { %v1297_v41 = vsel %vm4886_vm13, -0.00674, %v1185_v36  ;;  %v1298_v37 = vsel %vm4887_vm8, -0.00674, %v1186_v59  ;;  %v1195_v61 = vsel %vm1083_vm6, 1.0, %v4794_v53  ;;  %v1394_v36 = vmul.f32 %v1282_v19, %v2575_v13  ;;  %1446 = vst [vmem:[%s2673_s22 + $0xc0] sm:$0xff] %v1334_v15 }
 0x11e   : > { %vm4888_vm15 = vcmp.ge.f32.partialorder %v2629_v18, 3.32  ;;  %vm4889_vm1 = vcmp.ge.f32.partialorder %v2632_v40, 3.32  ;;  %v1196_v52 = vsel %vm1084_vm9, 1.0, %v4794_v53  ;;  %v1395_v59 = vmul.f32 %v1283_v62, %v2578_v51  ;;  %1447 = vst [vmem:[%s2673_s22 + $0xc8] sm:$0xff] %v1335_v5 }
 0x11f   : > { %v1299_v32 = vsel %vm4888_vm15, -0.00674, %v1187_v16  ;;  %v1300_v26 = vsel %vm4889_vm1, -0.00674, %v1188_v39  ;;  %vm4890_vm2 = vcmp.ge.f32.partialorder %v4826_v44, 3.32  ;;  %v1396_v19 = vmul.f32 %v1284_v8, %v2581_v47  ;;  %v3206_v47 = vpop.permute.xlu0 %190 }
 0x120   : > { %v1301_v33 = vsel %vm4890_vm2, -0.00674, %v1189_v2  ;;  %vm4891_vm12 = vcmp.ge.f32.partialorder %v4832_v42, 3.32  ;;  %v1197_v9 = vsel %vm1085_vm14, 1.0, %v4794_v53  ;;  %1448 = vst [vmem:[%s2673_s22 + $0xd0] sm:$0xff] %v1336_v31  ;;  %v1402_v31 = vmul.f32 %v1290_v28, %v4871_v20 }
 0x121   : > { %v1302_v0 = vsel %vm4891_vm12, -0.00674, %v1190_v4  ;;  %v1303_v13 = vsel %vm967_vm0, -0.00674, %v1191_v49  ;;  %v1304_v15 = vsel %vm968_vm3, -0.00674, %v1192_v46  ;;  %v1405_v54 = vmul.f32 %v1293_v38, %v4878_v7 }
 0x122   : > { %v1305_v16 = vsel %vm969_vm11, -0.00674, %v1193_v58  ;;  %vm4892_vm6 = vcmp.ge.f32.partialorder %v4848_v25, 3.32  ;;  %v4893_v5 = vld [vmem:[#allocation65_spill] sm:$0xff]  ;;  %1449 = vst [vmem:[%s2673_s22 + $0xd8] sm:$0xff] %v1337_v48  ;;  %v3226_v20 = vmul.f32 %v1299_v32, %v2629_v18  ;;  %v3229_v28 = vmul.f32 %v1300_v26, %v2632_v40 }
 0x123   : > { %v1306_v51 = vsel %vm4892_vm6, -0.00674, %v1194_v22  ;;  %v1397_v62 = vmul.f32 %v1285_v29, %v4893_v5  ;;  %v1307_v39 = vsel %vm971_vm10, -0.00674, %v1195_v61  ;;  %v1308_v2 = vsel %vm972_vm7, -0.00674, %v1196_v52 }
 0x124   : > { %1506 = vst [vmem:[%s2673_s22 + $0x2a0] sm:$0x7f] %v1394_v36  ;;  %v1309_v8 = vsel %vm973_vm4, -0.00674, %v1197_v9  ;;  %v4895_v4 = vld [vmem:[#allocation66_spill] sm:$0xff]  ;;  %v1400_v29 = vmul.f32 %v1288_v30, %v4868_v12  ;;  %v4896_v46 = vld [vmem:[#allocation68_spill] sm:$0xff]  ;;  %v1406_v61 = vmul.f32 %v1294_v60, %v4880_v34  ;;  %v1408_v30 = vmul.f32 %v1296_v6, %v2620_v17 }
 0x125   : > { %4894 = vst [vmem:[#allocation89_spill] sm:$0xff] %v3206_v47  ;;  %v1399_v49 = vmul.f32 %v1287_v35, %v4895_v4  ;;  %v1401_v58 = vmul.f32 %v1289_v57, %v4896_v46  ;;  %v4897_v22 = vld [vmem:[#allocation70_spill] sm:$0xff]  ;;  %v1407_v35 = vmul.f32 %v1295_v50, %v4882_v3  ;;  %v1409_v12 = vmul.f32 %v1297_v41, %v2623_v24  ;;  %v4900_v43 = vld [vmem:[#allocation5_spill] sm:$0xff]  ;;  %v4906_v41 = vld [vmem:[#allocation11_spill] sm:$0xff] }
 0x126   : > { %1507 = vst [vmem:[%s2673_s22 + $0x2a8] sm:$0x7f] %v1395_v59  ;;  %v1403_v48 = vmul.f32 %v1291_v55, %v4897_v22  ;;  %v1410_v57 = vmul.f32 %v1298_v37, %v2626_v27  ;;  %v3232_v55 = vmul.f32 %v1301_v33, %v4826_v44  ;;  %v3236_v17 = vmul.f32 %v1302_v0, %v4832_v42  ;;  %v4904_v60 = vld [vmem:[#allocation9_spill] sm:$0xff]  ;;  %v4905_v50 = vld [vmem:[#allocation10_spill] sm:$0xff]  ;;  %v4907_v32 = vld [vmem:[#allocation12_spill] sm:$0xff] }
 0x127   : > { %1508 = vst [vmem:[%s2673_s22 + $0x2b0] sm:$0x7f] %v1396_v19  ;;  %v3239_v24 = vmul.f32 %v1303_v13, %v4835_v45  ;;  %v3242_v21 = vmul.f32 %v1304_v15, %v4839_v10  ;;  %v3245_v27 = vmul.f32 %v1305_v16, %v4844_v63  ;;  %v3249_v18 = vmul.f32 %v1306_v51, %v4848_v25  ;;  %v4898_v45 = vld [vmem:[#allocation49_spill] sm:$0xff]  ;;  %v4899_v10 = vld [vmem:[#allocation4_spill] sm:$0xff]  ;;  %v4901_v25 = vld [vmem:[#allocation6_spill] sm:$0xff] }
 0x128   : > { %1509 = vst [vmem:[%s2673_s22 + $0x2b8] sm:$0x7f] %v1397_v62  ;;  %v3252_v40 = vmul.f32 %v1307_v39, %v4853_v1  ;;  %v3255_v44 = vmul.f32 %v1308_v2, %v4856_v23  ;;  %v3258_v42 = vmul.f32 %v1309_v8, %v4859_v56  ;;  %v350_v63 = vmul.f32 %v4899_v10, %v4898_v45  ;;  %v4902_v1 = vld [vmem:[#allocation7_spill] sm:$0xff]  ;;  %v4903_v23 = vld [vmem:[#allocation8_spill] sm:$0xff]  ;;  %v4908_v36 = vld [vmem:[#allocation13_spill] sm:$0xff]  ;;  %v419_v2 = vpop.permute.xlu0 %418 }
 0x129   : > { %1510 = vst [vmem:[%s2673_s22 + $0x2c0] sm:$0x7f] %v1398_v14  ;;  %v351_v7 = vmul.f32 %v4900_v43, %v4898_v45  ;;  %v352_v38 = vmul.f32 %v4901_v25, %v4898_v45  ;;  %v353_v34 = vmul.f32 %v4902_v1, %v4898_v45  ;;  %v354_v56 = vmul.f32 %v4903_v23, %v4898_v45  ;;  %v4909_v33 = vld [vmem:[#allocation14_spill] sm:$0xff]  ;;  %v4910_v59 = vld [vmem:[#allocation15_spill] sm:$0xff]  ;;  %v4911_v13 = vld [vmem:[#allocation16_spill] sm:$0xff] }
 0x12a   : > { %1511 = vst [vmem:[%s2673_s22 + $0x2c8] sm:$0x7f] %v1399_v49  ;;  %v355_v3 = vmul.f32 %v4904_v60, %v4898_v45  ;;  %v356_v6 = vmul.f32 %v4905_v50, %v4898_v45  ;;  %v357_v37 = vmul.f32 %v4906_v41, %v4898_v45  ;;  %v358_v26 = vmul.f32 %v4907_v32, %v4898_v45  ;;  %v4912_v19 = vld [vmem:[#allocation17_spill] sm:$0xff]  ;;  %v4913_v51 = vld [vmem:[#allocation18_spill] sm:$0xff]  ;;  %v4914_v62 = vld [vmem:[#allocation19_spill] sm:$0xff] }
 0x12b   : > { %1512 = vst [vmem:[%s2673_s22 + $0x2d0] sm:$0x7f] %v1400_v29  ;;  %v359_v52 = vmul.f32 %v4908_v36, %v4898_v45  ;;  %v360_v0 = vmul.f32 %v4909_v33, %v4898_v45  ;;  %v361_v9 = vmul.f32 %v4910_v59, %v4898_v45  ;;  %v362_v15 = vmul.f32 %v4911_v13, %v4898_v45  ;;  %v4915_v14 = vld [vmem:[#allocation20_spill] sm:$0xff]  ;;  %v4916_v4 = vld [vmem:[#allocation21_spill] sm:$0xff]  ;;  %v4917_v29 = vld [vmem:[#allocation22_spill] sm:$0xff] }
 0x12c   : > { %1513 = vst [vmem:[%s2673_s22 + $0x2d8] sm:$0x7f] %v1401_v58  ;;  %v363_v16 = vmul.f32 %v4912_v19, %v4898_v45  ;;  %v364_v5 = vmul.f32 %v4913_v51, %v4898_v45  ;;  %v365_v39 = vmul.f32 %v4914_v62, %v4898_v45  ;;  %v366_v8 = vmul.f32 %v4915_v14, %v4898_v45  ;;  %v4918_v58 = vld [vmem:[#allocation23_spill] sm:$0xff]  ;;  %v4919_v22 = vld [vmem:[#allocation24_spill] sm:$0xff]  ;;  %v4921_v62 = vld [vmem:[#allocation26_spill] sm:$0xff] }
 0x12d   : > { %1514 = vst [vmem:[%s2673_s22 + $0x2e0] sm:$0x7f] %v1402_v31  ;;  %v367_v49 = vmul.f32 %v4916_v4, %v4898_v45  ;;  %v368_v46 = vmul.f32 %v4917_v29, %v4898_v45  ;;  %v369_v31 = vmul.f32 %v4918_v58, %v4898_v45  ;;  %v372_v14 = vmul.f32 %v4921_v62, %v4898_v45  ;;  %v4922_v51 = vld [vmem:[#allocation27_spill] sm:$0xff]  ;;  %v4923_v29 = vld [vmem:[#allocation28_spill] sm:$0xff]  ;;  %v4924_v58 = vld [vmem:[#allocation29_spill] sm:$0xff] }
 0x12e   : > { %1515 = vst [vmem:[%s2673_s22 + $0x2e8] sm:$0x7f] %v1403_v48  ;;  %v370_v48 = vmul.f32 %v4919_v22, %v4898_v45  ;;  %v373_v4 = vmul.f32 %v4922_v51, %v4898_v45  ;;  %v374_v19 = vmul.f32 %v4923_v29, %v4898_v45  ;;  %v4925_v13 = vld [vmem:[#allocation30_spill] sm:$0xff]  ;;  %v4926_v59 = vld [vmem:[#allocation31_spill] sm:$0xff]  ;;  %v3325_v62 = vadd.f32 %v419_v2, %v350_v63  ;;  %v4941_v32 = vld [vmem:[#allocation44_spill] sm:$0xff] }
 0x12f   : > { %1516 = vst [vmem:[%s2673_s22 + $0x2f0] sm:$0x7f] %v1404_v11  ;;  %v4920_v11 = vld [vmem:[#allocation25_spill] sm:$0xff]  ;;  %v376_v22 = vmul.f32 %v4925_v13, %v4898_v45  ;;  %v3327_v33 = vadd.f32 %v419_v2, %v351_v7  ;;  %v3329_v51 = vadd.f32 %v419_v2, %v352_v38  ;;  %v3334_v29 = vadd.f32 %v419_v2, %v354_v56  ;;  %v4944_v50 = vld [vmem:[#allocation47_spill] sm:$0xff]  ;;  %v4945_v60 = vld [vmem:[#allocation48_spill] sm:$0xff] }
 0x130   : > { %1517 = vst [vmem:[%s2673_s22 + $0x2f8] sm:$0x7f] %v1405_v54  ;;  %v371_v54 = vmul.f32 %v4920_v11, %v4898_v45  ;;  %v377_v11 = vmul.f32 %v4926_v59, %v4898_v45  ;;  %v3338_v13 = vadd.f32 %v419_v2, %v356_v6  ;;  %v3340_v36 = vadd.f32 %v419_v2, %v357_v37  ;;  %v4940_v59 = vld [vmem:[#allocation43_spill] sm:$0xff]  ;;  %v4951_v10 = vld [vmem:[#allocation56_spill] sm:$0xff]  ;;  %v4952_v47 = vld [vmem:[#allocation57_spill] sm:$0xff] }
 0x131   : > { %1518 = vst [vmem:[%s2673_s22 + $0x300] sm:$0x7f] %v1406_v61  ;;  %v375_v61 = vmul.f32 %v4924_v58, %v4898_v45  ;;  %v3336_v58 = vadd.f32 %v419_v2, %v355_v3  ;;  %v3345_v45 = vadd.f32 %v419_v2, %v359_v52  ;;  %v3347_v63 = vadd.f32 %v419_v2, %v360_v0  ;;  %v4953_v53 = vld [vmem:[#allocation58_spill] sm:$0xff] }
 0x132   : > { %1519 = vst [vmem:[%s2673_s22 + $0x308] sm:$0x7f] %v1407_v35  ;;  %v3331_v35 = vadd.f32 %v419_v2, %v353_v34  ;;  %v3349_v7 = vadd.f32 %v419_v2, %v361_v9  ;;  %v3355_v38 = vadd.f32 %v419_v2, %v363_v16  ;;  %v3357_v34 = vadd.f32 %v419_v2, %v364_v5 }
 0x133   : > { %1520 = vst [vmem:[%s2673_s22 + $0x310] sm:$0x7f] %v1408_v30  ;;  %v3343_v30 = vadd.f32 %v419_v2, %v358_v26  ;;  %v3359_v56 = vadd.f32 %v419_v2, %v365_v39  ;;  %v3363_v3 = vadd.f32 %v419_v2, %v366_v8  ;;  %v3365_v6 = vadd.f32 %v419_v2, %v367_v49 }
 0x134   : > { %1521 = vst [vmem:[%s2673_s22 + $0x318] sm:$0x7f] %v1409_v12  ;;  %v3353_v12 = vadd.f32 %v419_v2, %v362_v15  ;;  %v3367_v37 = vadd.f32 %v419_v2, %v368_v46  ;;  %v3373_v26 = vadd.f32 %v419_v2, %v370_v48  ;;  %v3375_v52 = vadd.f32 %v419_v2, %v371_v54  ;;  %v4933_v46 = vld [vmem:[#allocation36_spill] sm:$0xff] }
 0x135   : > { %1522 = vst [vmem:[%s2673_s22 + $0x320] sm:$0x7f] %v1410_v57  ;;  %v548_v57 = vpop.permute.xlu1 %547  ;;  %v3377_v0 = vadd.f32 %v419_v2, %v372_v14  ;;  %v3383_v9 = vadd.f32 %v419_v2, %v374_v19  ;;  %v3385_v15 = vadd.f32 %v419_v2, %v375_v61  ;;  %v3387_v16 = vadd.f32 %v419_v2, %v376_v22  ;;  %v4931_v14 = vld [vmem:[#allocation34_spill] sm:$0xff]  ;;  %v4937_v54 = vld [vmem:[#allocation40_spill] sm:$0xff] }
 0x136   : > { %1523 = vst [vmem:[%s2673_s22 + $0x328] sm:$0x7f] %v3226_v20  ;;  %v3369_v20 = vadd.f32 %v419_v2, %v369_v31  ;;  %v3389_v5 = vadd.f32 %v419_v2, %v377_v11  ;;  %v695_v8 = vmul.f32 %v4931_v14, %v548_v57  ;;  %v697_v31 = vmul.f32 %v4933_v46, %v548_v57  ;;  %v4935_v22 = vld [vmem:[#allocation38_spill] sm:$0xff] }
 0x137   : > { %1524 = vst [vmem:[%s2673_s22 + $0x330] sm:$0x7f] %v3229_v28  ;;  %v3379_v28 = vadd.f32 %v419_v2, %v373_v4  ;;  %v4932_v4 = vld [vmem:[#allocation35_spill] sm:$0xff]  ;;  %v699_v48 = vmul.f32 %v4935_v22, %v548_v57  ;;  %v701_v61 = vmul.f32 %v4937_v54, %v548_v57  ;;  %v704_v46 = vmul.f32 %v4940_v59, %v548_v57  ;;  %v4948_v59 = vld [vmem:[#allocation53_spill] sm:$0xff] }
 0x138   : > { %1525 = vst [vmem:[%s2673_s22 + $0x338] sm:$0x7f] %v3232_v55  ;;  %v4930_v55 = vld [vmem:[#allocation33_spill] sm:$0xff]  ;;  %v696_v49 = vmul.f32 %v4932_v4, %v548_v57  ;;  %v4936_v2 = vld [vmem:[#allocation39_spill] sm:$0xff]  ;;  %v705_v41 = vmul.f32 %v4941_v32, %v548_v57  ;;  %v708_v54 = vmul.f32 %v4944_v50, %v548_v57  ;;  %v709_v23 = vmul.f32 %v4945_v60, %v548_v57  ;;  %v4949_v32 = vld [vmem:[#allocation54_spill] sm:$0xff] }
 0x139   : > { %1526 = vst [vmem:[%s2673_s22 + $0x340] sm:$0x7f] %v3236_v17  ;;  %v694_v39 = vmul.f32 %v4930_v55, %v548_v57  ;;  %v4934_v17 = vld [vmem:[#allocation37_spill] sm:$0xff]  ;;  %v700_v11 = vmul.f32 %v4936_v2, %v548_v57  ;;  %v4939_v55 = vld [vmem:[#allocation42_spill] sm:$0xff]  ;;  %v712_v25 = vmul.f32 %v4948_v59, %v548_v57  ;;  %v713_v43 = vmul.f32 %v4949_v32, %v548_v57 }
 0x13a   : > { %4927 = vst [vmem:[#allocation90_spill] sm:$0xff] %v3385_v15  ;;  %v698_v19 = vmul.f32 %v4934_v17, %v548_v57  ;;  %v703_v4 = vmul.f32 %v4939_v55, %v548_v57  ;;  %v4943_v17 = vld [vmem:[#allocation46_spill] sm:$0xff]  ;;  %v4947_v55 = vld [vmem:[#allocation52_spill] sm:$0xff]  ;;  %v716_v50 = vmul.f32 %v4952_v47, %v548_v57  ;;  %v717_v60 = vmul.f32 %v4953_v53, %v548_v57 }
 0x13b   : > { %4928 = vst [vmem:[#allocation91_spill] sm:$0xff] %v3387_v16  ;;  %v707_v2 = vmul.f32 %v4943_v17, %v548_v57  ;;  %v711_v1 = vmul.f32 %v4947_v55, %v548_v57  ;;  %v715_v17 = vmul.f32 %v4951_v10, %v548_v57  ;;  %v4956_v16 = vld [vmem:[#allocation61_spill] sm:$0xff]  ;;  %v4957_v15 = vld [vmem:[#allocation62_spill] sm:$0xff]  ;;  %v3440_v47 = vadd.f32 %v696_v49, %v3329_v51 }
 0x13c   : > { %4929 = vst [vmem:[#allocation92_spill] sm:$0xff] %v3389_v5  ;;  %v4955_v5 = vld [vmem:[#allocation60_spill] sm:$0xff]  ;;  %v720_v59 = vmul.f32 %v4956_v16, %v548_v57  ;;  %v721_v32 = vmul.f32 %v4957_v15, %v548_v57  ;;  %v3443_v53 = vadd.f32 %v697_v31, %v3331_v35  ;;  %v3461_v51 = vadd.f32 %v703_v4, %v3345_v45  ;;  %v5019_v15 = vld [vmem:[#allocation57_spill] sm:$0xff]  ;;  %v5020_v16 = vld [vmem:[#allocation58_spill] sm:$0xff] }
 0x13d   : > { %1527 = vst [vmem:[%s2673_s22 + $0x348] sm:$0x7f] %v3239_v24  ;;  %v4938_v24 = vld [vmem:[#allocation41_spill] sm:$0xff]  ;;  %v719_v55 = vmul.f32 %v4955_v5, %v548_v57  ;;  %v3449_v5 = vadd.f32 %v699_v48, %v3336_v58  ;;  %v3464_v35 = vadd.f32 %v704_v46, %v3347_v63  ;;  %v3485_v63 = vadd.f32 %v711_v1, %v3365_v6 }
 0x13e   : > { %1528 = vst [vmem:[%s2673_s22 + $0x350] sm:$0x7f] %v3242_v21  ;;  %v702_v14 = vmul.f32 %v4938_v24, %v548_v57  ;;  %v4942_v21 = vld [vmem:[#allocation45_spill] sm:$0xff]  ;;  %vm920_vm0 = vcmp.ge.f32.partialorder %v3440_v47, 3.32  ;;  %vm1032_vm4 = vcmp.ge.f32.partialorder %v3440_v47, 0.0 }
 0x13f   : > { %1529 = vst [vmem:[%s2673_s22 + $0x358] sm:$0x7f] %v3245_v27  ;;  %v706_v22 = vmul.f32 %v4942_v21, %v548_v57  ;;  %v4946_v27 = vld [vmem:[#allocation51_spill] sm:$0xff]  ;;  %vm921_vm10 = vcmp.ge.f32.partialorder %v3443_v53, 3.32  ;;  %vm1033_vm8 = vcmp.ge.f32.partialorder %v3443_v53, 0.0 }
 0x140   : > { %1530 = vst [vmem:[%s2673_s22 + $0x360] sm:$0x7f] %v3249_v18  ;;  %v710_v24 = vmul.f32 %v4946_v27, %v548_v57  ;;  %v4950_v18 = vld [vmem:[#allocation55_spill] sm:$0xff]  ;;  %vm927_vm12 = vcmp.ge.f32.partialorder %v3461_v51, 3.32  ;;  %vm1035_vm5 = vcmp.ge.f32.partialorder %v3449_v5, 0.0 }
 0x141   : > { %1531 = vst [vmem:[%s2673_s22 + $0x368] sm:$0x7f] %v3252_v40  ;;  %v714_v21 = vmul.f32 %v4950_v18, %v548_v57  ;;  %v4954_v40 = vld [vmem:[#allocation59_spill] sm:$0xff]  ;;  %v3437_v18 = vadd.f32 %v695_v8, %v3327_v33  ;;  %v3458_v33 = vadd.f32 %v702_v14, %v3343_v30  ;;  %v3470_v58 = vadd.f32 %v706_v22, %v3353_v12 }
 0x142   : > { %1532 = vst [vmem:[%s2673_s22 + $0x370] sm:$0x7f] %v3255_v44  ;;  %v718_v27 = vmul.f32 %v4954_v40, %v548_v57  ;;  %v3434_v44 = vadd.f32 %v694_v39, %v3325_v62  ;;  %v3452_v57 = vadd.f32 %v700_v11, %v3338_v13  ;;  %v3455_v62 = vadd.f32 %v701_v61, %v3340_v36 }
 0x143   : > { %1533 = vst [vmem:[%s2673_s22 + $0x378] sm:$0x7f] %v3258_v42  ;;  %v3446_v42 = vadd.f32 %v698_v19, %v3334_v29  ;;  %v3467_v29 = vadd.f32 %v705_v41, %v3349_v7  ;;  %v3473_v13 = vadd.f32 %v707_v2, %v3355_v38  ;;  %v3476_v36 = vadd.f32 %v708_v54, %v3357_v34 }
 0x144   : > { %v3479_v30 = vadd.f32 %v709_v23, %v3359_v56  ;;  %v3482_v45 = vadd.f32 %v710_v24, %v3363_v3  ;;  %v3488_v41 = vadd.f32 %v712_v25, %v3367_v37  ;;  %v3491_v7 = vadd.f32 %v713_v43, %v3369_v20  ;;  %v4958_v25 = vld [vmem:[#allocation90_spill] sm:$0xff]  ;;  %v4959_v43 = vld [vmem:[#allocation91_spill] sm:$0xff] }
 0x145   : > { %v3494_v12 = vadd.f32 %v714_v21, %v3373_v26  ;;  %v3497_v38 = vadd.f32 %v715_v17, %v3375_v52  ;;  %v3500_v23 = vadd.f32 %v716_v50, %v3377_v0  ;;  %v3503_v34 = vadd.f32 %v717_v60, %v3379_v28  ;;  %v4960_v60 = vld [vmem:[#allocation92_spill] sm:$0xff] }
 0x146   : > { %v3506_v1 = vadd.f32 %v718_v27, %v3383_v9  ;;  %v3509_v56 = vadd.f32 %v719_v55, %v4958_v25  ;;  %vm918_vm9 = vcmp.ge.f32.partialorder %v3434_v44, 3.32  ;;  %vm1030_vm3 = vcmp.ge.f32.partialorder %v3434_v44, 0.0 }
 0x147   : > { %v3514_v3 = vadd.f32 %v720_v59, %v4959_v43  ;;  %vm919_vm14 = vcmp.ge.f32.partialorder %v3437_v18, 3.32  ;;  %vm1031_vm11 = vcmp.ge.f32.partialorder %v3437_v18, 0.0  ;;  %v3520_v50 = vadd.f32 %v721_v32, %v4960_v60 }
 0x148   : > { %vm922_vm7 = vcmp.ge.f32.partialorder %v3446_v42, 3.32  ;;  %v4961_v59 = vmov 0.01   ;;  %vm925_vm15 = vcmp.ge.f32.partialorder %v3455_v62, 3.32 }
 0x149   : > { %v1142_v6 = vsel %vm1030_vm3, 1.0, %v4961_v59  ;;  %vm1034_vm2 = vcmp.ge.f32.partialorder %v3446_v42, 0.0  ;;  %v1143_v32 = vsel %vm1031_vm11, 1.0, %v4961_v59  ;;  %vm928_vm6 = vcmp.ge.f32.partialorder %v3464_v35, 3.32 }
 0x14a   : > { %v1144_v37 = vsel %vm1032_vm4, 1.0, %v4961_v59  ;;  %vm1036_vm3 = vcmp.ge.f32.partialorder %v3452_v57, 0.0  ;;  %v1145_v20 = vsel %vm1033_vm8, 1.0, %v4961_v59  ;;  %v1254_v26 = vsel %vm918_vm9, -0.00674, %v1142_v6 }
 0x14b   : > { %vm930_vm1 = vcmp.ge.f32.partialorder %v3470_v58, 3.32  ;;  %vm1037_vm11 = vcmp.ge.f32.partialorder %v3455_v62, 0.0  ;;  %v1146_v52 = vsel %vm1034_vm2, 1.0, %v4961_v59  ;;  %v1255_v0 = vsel %vm919_vm14, -0.00674, %v1143_v32 }
 0x14c   : > { %vm931_vm4 = vcmp.ge.f32.partialorder %v3473_v13, 3.32  ;;  %vm1038_vm13 = vcmp.ge.f32.partialorder %v3458_v33, 0.0  ;;  %v1147_v28 = vsel %vm1035_vm5, 1.0, %v4961_v59  ;;  %v1256_v9 = vsel %vm920_vm0, -0.00674, %v1144_v37 }
 0x14d   : > { %vm932_vm9 = vcmp.ge.f32.partialorder %v3476_v36, 3.32  ;;  %vm1039_vm8 = vcmp.ge.f32.partialorder %v3461_v51, 0.0  ;;  %v1148_v55 = vsel %vm1036_vm3, 1.0, %v4961_v59  ;;  %v1257_v39 = vsel %vm921_vm10, -0.00674, %v1145_v20 }
 0x14e   : > { %v1366_v14 = vmul.f32 %v1254_v26, %v3434_v44  ;;  %vm933_vm14 = vcmp.ge.f32.partialorder %v3479_v30, 3.32  ;;  %vm1040_vm2 = vcmp.ge.f32.partialorder %v3464_v35, 0.0  ;;  %v1149_v8 = vsel %vm1037_vm11, 1.0, %v4961_v59 }
 0x14f   : > { %v1258_v4 = vsel %vm922_vm7, -0.00674, %v1146_v52  ;;  %v1367_v49 = vmul.f32 %v1255_v0, %v3437_v18  ;;  %vm934_vm0 = vcmp.ge.f32.partialorder %v3482_v45, 3.32  ;;  %vm1041_vm5 = vcmp.ge.f32.partialorder %v3467_v29, 0.0 }
 0x150   : > { %v1150_v46 = vsel %vm1038_vm13, 1.0, %v4961_v59  ;;  %vm4962_vm10 = vcmp.ge.f32.partialorder %v3449_v5, 3.32  ;;  %v1368_v17 = vmul.f32 %v1256_v9, %v3440_v47  ;;  %vm935_vm3 = vcmp.ge.f32.partialorder %v3485_v63, 3.32  ;;  %1478 = vst [vmem:[%s2673_s22 + $0x1c0] sm:$0xff] %v1366_v14 }
 0x151   : > { %v1259_v31 = vsel %vm4962_vm10, -0.00674, %v1147_v28  ;;  %vm1042_vm11 = vcmp.ge.f32.partialorder %v3470_v58, 0.0  ;;  %v1151_v19 = vsel %vm1039_vm8, 1.0, %v4961_v59  ;;  %vm4963_vm7 = vcmp.ge.f32.partialorder %v3452_v57, 3.32 }
 0x152   : > { %v1260_v22 = vsel %vm4963_vm7, -0.00674, %v1148_v55  ;;  %v1369_v48 = vmul.f32 %v1257_v39, %v3443_v53  ;;  %vm1043_vm10 = vcmp.ge.f32.partialorder %v3473_v13, 0.0  ;;  %v1152_v47 = vsel %vm1040_vm2, 1.0, %v4961_v59  ;;  %1479 = vst [vmem:[%s2673_s22 + $0x1c8] sm:$0xff] %v1367_v49 }
 0x153   : > { %v1261_v2 = vsel %vm925_vm15, -0.00674, %v1149_v8  ;;  %v1370_v11 = vmul.f32 %v1258_v4, %v3446_v42  ;;  %vm937_vm8 = vcmp.ge.f32.partialorder %v3491_v7, 3.32  ;;  %vm1044_vm7 = vcmp.ge.f32.partialorder %v3476_v36, 0.0  ;;  %1480 = vst [vmem:[%s2673_s22 + $0x1d0] sm:$0xff] %v1368_v17 }
 0x154   : > { %v1153_v53 = vsel %vm1041_vm5, 1.0, %v4961_v59  ;;  %vm4964_vm13 = vcmp.ge.f32.partialorder %v3458_v33, 3.32  ;;  %v1371_v61 = vmul.f32 %v1259_v31, %v3449_v5  ;;  %vm938_vm15 = vcmp.ge.f32.partialorder %v3494_v12, 3.32  ;;  %1481 = vst [vmem:[%s2673_s22 + $0x1d8] sm:$0xff] %v1369_v48 }
 0x155   : > { %v1262_v54 = vsel %vm4964_vm13, -0.00674, %v1150_v46  ;;  %vm1045_vm2 = vcmp.ge.f32.partialorder %v3479_v30, 0.0  ;;  %v1154_v24 = vsel %vm1042_vm11, 1.0, %v4961_v59  ;;  %v1263_v21 = vsel %vm927_vm12, -0.00674, %v1151_v19 }
 0x156   : > { %v1372_v27 = vmul.f32 %v1260_v22, %v3452_v57  ;;  %vm1046_vm13 = vcmp.ge.f32.partialorder %v3482_v45, 0.0  ;;  %v1155_v5 = vsel %vm1043_vm10, 1.0, %v4961_v59  ;;  %v1264_v18 = vsel %vm928_vm6, -0.00674, %v1152_v47  ;;  %1482 = vst [vmem:[%s2673_s22 + $0x1e0] sm:$0xff] %v1370_v11 }
 0x157   : > { %v1373_v44 = vmul.f32 %v1261_v2, %v3455_v62  ;;  %vm940_vm12 = vcmp.ge.f32.partialorder %v3500_v23, 3.32  ;;  %vm1047_vm11 = vcmp.ge.f32.partialorder %v3485_v63, 0.0  ;;  %v1156_v42 = vsel %vm1044_vm7, 1.0, %v4961_v59  ;;  %1483 = vst [vmem:[%s2673_s22 + $0x1e8] sm:$0xff] %v1371_v61 }
 0x158   : > { %vm4965_vm5 = vcmp.ge.f32.partialorder %v3467_v29, 3.32  ;;  %v1374_v25 = vmul.f32 %v1262_v54, %v3458_v33  ;;  %vm941_vm6 = vcmp.ge.f32.partialorder %v3503_v34, 3.32  ;;  %vm1048_vm10 = vcmp.ge.f32.partialorder %v3488_v41, 0.0  ;;  %1484 = vst [vmem:[%s2673_s22 + $0x1f0] sm:$0xff] %v1372_v27 }
 0x159   : > { %v1265_v57 = vsel %vm4965_vm5, -0.00674, %v1153_v53  ;;  %v1157_v62 = vsel %vm1045_vm2, 1.0, %v4961_v59  ;;  %v1266_v43 = vsel %vm930_vm1, -0.00674, %v1154_v24  ;;  %v1375_v60 = vmul.f32 %v1263_v21, %v3461_v51  ;;  %1485 = vst [vmem:[%s2673_s22 + $0x1f8] sm:$0xff] %v1373_v44 }
 0x15a   : > { %vm942_vm7 = vcmp.ge.f32.partialorder %v3506_v1, 3.32  ;;  %vm1049_vm5 = vcmp.ge.f32.partialorder %v3491_v7, 0.0  ;;  %v1158_v33 = vsel %vm1046_vm13, 1.0, %v4961_v59  ;;  %v1267_v6 = vsel %vm931_vm4, -0.00674, %v1155_v5 }
 0x15b   : > { %v1376_v32 = vmul.f32 %v1264_v18, %v3464_v35  ;;  %vm1050_vm1 = vcmp.ge.f32.partialorder %v3494_v12, 0.0  ;;  %v1159_v51 = vsel %vm1047_vm11, 1.0, %v4961_v59  ;;  %v1268_v37 = vsel %vm932_vm9, -0.00674, %v1156_v42  ;;  %1486 = vst [vmem:[%s2673_s22 + $0x200] sm:$0xff] %v1374_v25  ;;  %v4968_v24 = vld [vmem:[#allocation89_spill] sm:$0xff] }
 0x15c   : > { %v1377_v20 = vmul.f32 %v1265_v57, %v3467_v29  ;;  %vm1051_vm2 = vcmp.ge.f32.partialorder %v3497_v38, 0.0  ;;  %v1160_v35 = vsel %vm1048_vm10, 1.0, %v4961_v59  ;;  %v1269_v26 = vsel %vm933_vm14, -0.00674, %v1157_v62  ;;  %1487 = vst [vmem:[%s2673_s22 + $0x208] sm:$0xff] %v1375_v60  ;;  %v4969_v21 = vld [vmem:[#allocation4_spill] sm:$0xff] }
 0x15d   : > { %v1378_v52 = vmul.f32 %v1266_v43, %v3470_v58  ;;  %vm1052_vm4 = vcmp.ge.f32.partialorder %v3500_v23, 0.0  ;;  %v1161_v29 = vsel %vm1049_vm5, 1.0, %v4961_v59  ;;  %v1270_v0 = vsel %vm934_vm0, -0.00674, %v1158_v33  ;;  %1488 = vst [vmem:[%s2673_s22 + $0x210] sm:$0xff] %v1376_v32  ;;  %v4971_v42 = vld [vmem:[#allocation6_spill] sm:$0xff] }
 0x15e   : > { %v1379_v28 = vmul.f32 %v1267_v6, %v3473_v13  ;;  %vm1053_vm9 = vcmp.ge.f32.partialorder %v3503_v34, 0.0  ;;  %v1162_v58 = vsel %vm1050_vm1, 1.0, %v4961_v59  ;;  %v1271_v9 = vsel %vm935_vm3, -0.00674, %v1159_v51  ;;  %1489 = vst [vmem:[%s2673_s22 + $0x218] sm:$0xff] %v1377_v20  ;;  %v4973_v62 = vld [vmem:[#allocation8_spill] sm:$0xff] }
 0x15f   : > { %v1380_v55 = vmul.f32 %v1268_v37, %v3476_v36  ;;  %vm1054_vm14 = vcmp.ge.f32.partialorder %v3506_v1, 0.0  ;;  %v1163_v13 = vsel %vm1051_vm2, 1.0, %v4961_v59  ;;  %vm4966_vm0 = vcmp.ge.f32.partialorder %v3488_v41, 3.32  ;;  %1490 = vst [vmem:[%s2673_s22 + $0x220] sm:$0xff] %v1378_v52  ;;  %v4974_v60 = vld [vmem:[#allocation9_spill] sm:$0xff] }
 0x160   : > { %v1272_v39 = vsel %vm4966_vm0, -0.00674, %v1160_v35  ;;  %v1381_v14 = vmul.f32 %v1269_v26, %v3479_v30  ;;  %vm1055_vm13 = vcmp.ge.f32.partialorder %v3509_v56, 0.0  ;;  %v1164_v36 = vsel %vm1052_vm4, 1.0, %v4961_v59  ;;  %1491 = vst [vmem:[%s2673_s22 + $0x228] sm:$0xff] %v1379_v28  ;;  %v4975_v6 = vld [vmem:[#allocation10_spill] sm:$0xff] }
 0x161   : > { %v1273_v8 = vsel %vm937_vm8, -0.00674, %v1161_v29  ;;  %v1382_v4 = vmul.f32 %v1270_v0, %v3482_v45  ;;  %vm1056_vm3 = vcmp.ge.f32.partialorder %v3514_v3, 0.0  ;;  %v1165_v30 = vsel %vm1053_vm9, 1.0, %v4961_v59  ;;  %1492 = vst [vmem:[%s2673_s22 + $0x230] sm:$0xff] %v1380_v55  ;;  %v4976_v51 = vld [vmem:[#allocation11_spill] sm:$0xff] }
 0x162   : > { %v1274_v49 = vsel %vm938_vm15, -0.00674, %v1162_v58  ;;  %v1383_v46 = vmul.f32 %v1271_v9, %v3485_v63  ;;  %vm1057_vm11 = vcmp.ge.f32.partialorder %v3520_v50, 0.0  ;;  %v1166_v45 = vsel %vm1054_vm14, 1.0, %v4961_v59  ;;  %1493 = vst [vmem:[%s2673_s22 + $0x238] sm:$0xff] %v1381_v14  ;;  %v4977_v37 = vld [vmem:[#allocation12_spill] sm:$0xff] }
 0x163   : > { %vm4967_vm8 = vcmp.ge.f32.partialorder %v3497_v38, 3.32  ;;  %v1384_v17 = vmul.f32 %v1272_v39, %v3488_v41  ;;  %vm943_vm10 = vcmp.ge.f32.partialorder %v3509_v56, 3.32  ;;  %v1167_v63 = vsel %vm1055_vm13, 1.0, %v4961_v59  ;;  %1494 = vst [vmem:[%s2673_s22 + $0x240] sm:$0xff] %v1382_v4 }
 0x164   : > { %v1275_v31 = vsel %vm4967_vm8, -0.00674, %v1163_v13  ;;  %v1276_v19 = vsel %vm940_vm12, -0.00674, %v1164_v36  ;;  %v1385_v22 = vmul.f32 %v1273_v8, %v3491_v7  ;;  %vm944_vm15 = vcmp.ge.f32.partialorder %v3514_v3, 3.32 }
 0x165   : > { %v1168_v41 = vsel %vm1056_vm3, 1.0, %v4961_v59  ;;  %v1277_v48 = vsel %vm941_vm6, -0.00674, %v1165_v30  ;;  %v1386_v47 = vmul.f32 %v1274_v49, %v3494_v12  ;;  %vm945_vm5 = vcmp.ge.f32.partialorder %v3520_v50, 3.32  ;;  %1495 = vst [vmem:[%s2673_s22 + $0x248] sm:$0xff] %v1383_v46 }
 0x166   : > { %v1169_v7 = vsel %vm1057_vm11, 1.0, %v4961_v59  ;;  %v1278_v2 = vsel %vm942_vm7, -0.00674, %v1166_v45  ;;  %v1387_v11 = vmul.f32 %v1275_v31, %v3497_v38  ;;  %v1279_v53 = vsel %vm943_vm10, -0.00674, %v1167_v63  ;;  %1496 = vst [vmem:[%s2673_s22 + $0x250] sm:$0xff] %v1384_v17 }
 0x167   : > { %v1388_v54 = vmul.f32 %v1276_v19, %v3500_v23  ;;  %v1280_v12 = vsel %vm944_vm15, -0.00674, %v1168_v41  ;;  %v1389_v61 = vmul.f32 %v1277_v48, %v3503_v34  ;;  %1497 = vst [vmem:[%s2673_s22 + $0x258] sm:$0xff] %v1385_v22  ;;  %v322_v27 = vmul.f32 %v4969_v21, %v4968_v24  ;;  %v4970_v38 = vld [vmem:[#allocation5_spill] sm:$0xff]  ;;  %v4972_v34 = vld [vmem:[#allocation7_spill] sm:$0xff]  ;;  %v4979_v29 = vld [vmem:[#allocation14_spill] sm:$0xff] }
 0x168   : > { %v1281_v5 = vsel %vm945_vm5, -0.00674, %v1169_v7  ;;  %v1390_v18 = vmul.f32 %v1278_v2, %v3506_v1  ;;  %1498 = vst [vmem:[%s2673_s22 + $0x260] sm:$0xff] %v1386_v47  ;;  %v323_v44 = vmul.f32 %v4970_v38, %v4968_v24  ;;  %v324_v23 = vmul.f32 %v4971_v42, %v4968_v24  ;;  %v4978_v26 = vld [vmem:[#allocation13_spill] sm:$0xff]  ;;  %v4980_v0 = vld [vmem:[#allocation15_spill] sm:$0xff]  ;;  %v4981_v58 = vld [vmem:[#allocation16_spill] sm:$0xff] }
 0x169   : > { %v1391_v57 = vmul.f32 %v1279_v53, %v3509_v56  ;;  %1499 = vst [vmem:[%s2673_s22 + $0x268] sm:$0xff] %v1387_v11  ;;  %v325_v25 = vmul.f32 %v4972_v34, %v4968_v24  ;;  %v326_v43 = vmul.f32 %v4973_v62, %v4968_v24  ;;  %v327_v1 = vmul.f32 %v4974_v60, %v4968_v24  ;;  %v4982_v55 = vld [vmem:[#allocation17_spill] sm:$0xff]  ;;  %v4984_v14 = vld [vmem:[#allocation19_spill] sm:$0xff]  ;;  %v4985_v8 = vld [vmem:[#allocation20_spill] sm:$0xff] }
 0x16a   : > { %v1392_v33 = vmul.f32 %v1280_v12, %v3514_v3  ;;  %1500 = vst [vmem:[%s2673_s22 + $0x270] sm:$0xff] %v1388_v54  ;;  %v328_v32 = vmul.f32 %v4975_v6, %v4968_v24  ;;  %v329_v56 = vmul.f32 %v4976_v51, %v4968_v24  ;;  %v330_v20 = vmul.f32 %v4977_v37, %v4968_v24  ;;  %v4986_v30 = vld [vmem:[#allocation21_spill] sm:$0xff]  ;;  %v4987_v46 = vld [vmem:[#allocation22_spill] sm:$0xff]  ;;  %v4988_v31 = vld [vmem:[#allocation23_spill] sm:$0xff] }
 0x16b   : > { %v1393_v35 = vmul.f32 %v1281_v5, %v3520_v50  ;;  %1501 = vst [vmem:[%s2673_s22 + $0x278] sm:$0xff] %v1389_v61  ;;  %v331_v52 = vmul.f32 %v4978_v26, %v4968_v24  ;;  %v332_v3 = vmul.f32 %v4979_v29, %v4968_v24  ;;  %v333_v28 = vmul.f32 %v4980_v0, %v4968_v24  ;;  %v4983_v50 = vld [vmem:[#allocation18_spill] sm:$0xff]  ;;  %v4989_v63 = vld [vmem:[#allocation24_spill] sm:$0xff]  ;;  %v4990_v22 = vld [vmem:[#allocation25_spill] sm:$0xff] }
 0x16c   : > { %1502 = vst [vmem:[%s2673_s22 + $0x280] sm:$0xff] %v1390_v18  ;;  %v334_v9 = vmul.f32 %v4981_v58, %v4968_v24  ;;  %v335_v13 = vmul.f32 %v4982_v55, %v4968_v24  ;;  %v336_v39 = vmul.f32 %v4983_v50, %v4968_v24  ;;  %v337_v36 = vmul.f32 %v4984_v14, %v4968_v24  ;;  %v4991_v48 = vld [vmem:[#allocation26_spill] sm:$0xff]  ;;  %v4992_v7 = vld [vmem:[#allocation27_spill] sm:$0xff]  ;;  %v4993_v11 = vld [vmem:[#allocation28_spill] sm:$0xff] }
 0x16d   : > { %1503 = vst [vmem:[%s2673_s22 + $0x288] sm:$0xff] %v1391_v57  ;;  %v338_v4 = vmul.f32 %v4985_v8, %v4968_v24  ;;  %v339_v49 = vmul.f32 %v4986_v30, %v4968_v24  ;;  %v340_v45 = vmul.f32 %v4987_v46, %v4968_v24  ;;  %v341_v17 = vmul.f32 %v4988_v31, %v4968_v24  ;;  %v4994_v54 = vld [vmem:[#allocation29_spill] sm:$0xff]  ;;  %v4995_v61 = vld [vmem:[#allocation30_spill] sm:$0xff]  ;;  %v4996_v5 = vld [vmem:[#allocation31_spill] sm:$0xff] }
 0x16e   : > { %1504 = vst [vmem:[%s2673_s22 + $0x290] sm:$0xff] %v1392_v33  ;;  %v342_v19 = vmul.f32 %v4989_v63, %v4968_v24  ;;  %v343_v41 = vmul.f32 %v4990_v22, %v4968_v24  ;;  %v344_v47 = vmul.f32 %v4991_v48, %v4968_v24  ;;  %v345_v2 = vmul.f32 %v4992_v7, %v4968_v24  ;;  %v4997_v38 = vld [vmem:[#allocation32_spill] sm:$0xff]  ;;  %v5018_v59 = vld [vmem:[#allocation55_spill] sm:$0xff] }
 0x16f   : > { %1505 = vst [vmem:[%s2673_s22 + $0x298] sm:$0xff] %v1393_v35  ;;  %v346_v53 = vmul.f32 %v4993_v11, %v4968_v24  ;;  %v347_v12 = vmul.f32 %v4994_v54, %v4968_v24  ;;  %v348_v21 = vmul.f32 %v4995_v61, %v4968_v24  ;;  %v349_v18 = vmul.f32 %v4996_v5, %v4968_v24  ;;  %v544_v35 = vpop.permute.xlu0 %543 }
 0x170   : > { %v454_v42 = vadd.f32 %v4997_v38, %v322_v27  ;;  %v455_v57 = vadd.f32 %v4997_v38, %v323_v44  ;;  %v456_v34 = vadd.f32 %v4997_v38, %v324_v23  ;;  %v457_v62 = vadd.f32 %v4997_v38, %v325_v25 }
 0x171   : > { %v458_v60 = vadd.f32 %v4997_v38, %v326_v43  ;;  %v459_v33 = vadd.f32 %v4997_v38, %v327_v1  ;;  %v460_v6 = vadd.f32 %v4997_v38, %v328_v32  ;;  %v461_v51 = vadd.f32 %v4997_v38, %v329_v56 }
 0x172   : > { %v462_v37 = vadd.f32 %v4997_v38, %v330_v20  ;;  %v463_v24 = vadd.f32 %v4997_v38, %v331_v52  ;;  %v464_v27 = vadd.f32 %v4997_v38, %v332_v3  ;;  %v465_v44 = vadd.f32 %v4997_v38, %v333_v28 }
 0x173   : > { %v466_v23 = vadd.f32 %v4997_v38, %v334_v9  ;;  %v467_v25 = vadd.f32 %v4997_v38, %v335_v13  ;;  %v468_v43 = vadd.f32 %v4997_v38, %v336_v39  ;;  %v469_v1 = vadd.f32 %v4997_v38, %v337_v36  ;;  %v4998_v13 = vld [vmem:[#allocation33_spill] sm:$0xff]  ;;  %v4999_v39 = vld [vmem:[#allocation34_spill] sm:$0xff]  ;;  %v5000_v36 = vld [vmem:[#allocation35_spill] sm:$0xff] }
 0x174   : > { %v470_v32 = vadd.f32 %v4997_v38, %v338_v4  ;;  %v471_v56 = vadd.f32 %v4997_v38, %v339_v49  ;;  %v472_v20 = vadd.f32 %v4997_v38, %v340_v45  ;;  %v473_v26 = vadd.f32 %v4997_v38, %v341_v17  ;;  %v5001_v4 = vld [vmem:[#allocation36_spill] sm:$0xff]  ;;  %v5002_v49 = vld [vmem:[#allocation37_spill] sm:$0xff]  ;;  %v5003_v45 = vld [vmem:[#allocation38_spill] sm:$0xff] }
 0x175   : > { %v474_v52 = vadd.f32 %v4997_v38, %v342_v19  ;;  %v475_v29 = vadd.f32 %v4997_v38, %v343_v41  ;;  %v476_v3 = vadd.f32 %v4997_v38, %v344_v47  ;;  %v477_v0 = vadd.f32 %v4997_v38, %v345_v2  ;;  %v5004_v17 = vld [vmem:[#allocation39_spill] sm:$0xff]  ;;  %v5005_v19 = vld [vmem:[#allocation40_spill] sm:$0xff]  ;;  %v5006_v41 = vld [vmem:[#allocation41_spill] sm:$0xff] }
 0x176   : > { %v478_v28 = vadd.f32 %v4997_v38, %v346_v53  ;;  %v479_v58 = vadd.f32 %v4997_v38, %v347_v12  ;;  %v480_v9 = vadd.f32 %v4997_v38, %v348_v21  ;;  %v481_v55 = vadd.f32 %v4997_v38, %v349_v18  ;;  %v5007_v47 = vld [vmem:[#allocation42_spill] sm:$0xff]  ;;  %v5008_v2 = vld [vmem:[#allocation43_spill] sm:$0xff]  ;;  %v5009_v53 = vld [vmem:[#allocation44_spill] sm:$0xff] }
 0x177   : > { %v666_v50 = vmul.f32 %v4998_v13, %v544_v35  ;;  %v667_v14 = vmul.f32 %v4999_v39, %v544_v35  ;;  %v668_v8 = vmul.f32 %v5000_v36, %v544_v35  ;;  %v669_v30 = vmul.f32 %v5001_v4, %v544_v35  ;;  %v5010_v12 = vld [vmem:[#allocation45_spill] sm:$0xff]  ;;  %v5011_v21 = vld [vmem:[#allocation46_spill] sm:$0xff]  ;;  %v5012_v18 = vld [vmem:[#allocation47_spill] sm:$0xff] }
 0x178   : > { %v670_v46 = vmul.f32 %v5002_v49, %v544_v35  ;;  %v671_v31 = vmul.f32 %v5003_v45, %v544_v35  ;;  %v672_v63 = vmul.f32 %v5004_v17, %v544_v35  ;;  %v673_v22 = vmul.f32 %v5005_v19, %v544_v35  ;;  %v5013_v13 = vld [vmem:[#allocation48_spill] sm:$0xff]  ;;  %v5014_v36 = vld [vmem:[#allocation51_spill] sm:$0xff]  ;;  %v5016_v17 = vld [vmem:[#allocation53_spill] sm:$0xff] }
 0x179   : > { %v674_v48 = vmul.f32 %v5006_v41, %v544_v35  ;;  %v675_v7 = vmul.f32 %v5007_v47, %v544_v35  ;;  %v676_v11 = vmul.f32 %v5008_v2, %v544_v35  ;;  %v677_v54 = vmul.f32 %v5009_v53, %v544_v35  ;;  %v5015_v49 = vld [vmem:[#allocation52_spill] sm:$0xff]  ;;  %v5017_v41 = vld [vmem:[#allocation54_spill] sm:$0xff] }
 0x17a   : > { %v678_v61 = vmul.f32 %v5010_v12, %v544_v35  ;;  %v679_v5 = vmul.f32 %v5011_v21, %v544_v35  ;;  %v680_v38 = vmul.f32 %v5012_v18, %v544_v35  ;;  %v681_v39 = vmul.f32 %v5013_v13, %v544_v35  ;;  %v5021_v13 = vld [vmem:[#allocation60_spill] sm:$0xff] }
 0x17b   : > { %v682_v4 = vmul.f32 %v5014_v36, %v544_v35  ;;  %v683_v45 = vmul.f32 %v5015_v49, %v544_v35  ;;  %v684_v19 = vmul.f32 %v5016_v17, %v544_v35  ;;  %v685_v47 = vmul.f32 %v5017_v41, %v544_v35  ;;  %v5022_v49 = vld [vmem:[#allocation61_spill] sm:$0xff]  ;;  %v5023_v41 = vld [vmem:[#allocation62_spill] sm:$0xff] }
 0x17c   : > { %v686_v2 = vmul.f32 %v5018_v59, %v544_v35  ;;  %v687_v53 = vmul.f32 %v4951_v10, %v544_v35  ;;  %v688_v12 = vmul.f32 %v5019_v15, %v544_v35  ;;  %v689_v21 = vmul.f32 %v5020_v16, %v544_v35 }
 0x17d   : > { %v690_v18 = vmul.f32 %v4954_v40, %v544_v35  ;;  %v691_v36 = vmul.f32 %v5021_v13, %v544_v35  ;;  %v692_v17 = vmul.f32 %v5022_v49, %v544_v35  ;;  %v693_v59 = vmul.f32 %v5023_v41, %v544_v35 }
 0x17e   : > { %v3857_v10 = vadd.f32 %v666_v50, %v454_v42  ;;  %v3859_v15 = vadd.f32 %v667_v14, %v455_v57  ;;  %v3861_v16 = vadd.f32 %v668_v8, %v456_v34  ;;  %v3863_v40 = vadd.f32 %v669_v30, %v457_v62 }
 0x17f   : > { %v3865_v13 = vadd.f32 %v670_v46, %v458_v60  ;;  %v3867_v49 = vadd.f32 %v671_v31, %v459_v33  ;;  %v3869_v35 = vadd.f32 %v672_v63, %v460_v6  ;;  %v3871_v41 = vadd.f32 %v673_v22, %v461_v51 }
 0x180   : > { %5024 = vst [vmem:[#allocation93_spill] sm:$0xff] %v3857_v10  ;;  %v3873_v42 = vadd.f32 %v674_v48, %v462_v37  ;;  %v3875_v50 = vadd.f32 %v675_v7, %v463_v24  ;;  %v3877_v10 = vadd.f32 %v676_v11, %v464_v27  ;;  %v3879_v57 = vadd.f32 %v677_v54, %v465_v44 }
 0x181   : > { %v3881_v34 = vadd.f32 %v678_v61, %v466_v23  ;;  %v3883_v62 = vadd.f32 %v679_v5, %v467_v25  ;;  %v3885_v60 = vadd.f32 %v680_v38, %v468_v43  ;;  %v3887_v33 = vadd.f32 %v681_v39, %v469_v1 }
 0x182   : > { %v3889_v6 = vadd.f32 %v682_v4, %v470_v32  ;;  %v3891_v51 = vadd.f32 %v683_v45, %v471_v56  ;;  %v3893_v37 = vadd.f32 %v684_v19, %v472_v20  ;;  %v3895_v24 = vadd.f32 %v685_v47, %v473_v26 }
 0x183   : > { %v3897_v27 = vadd.f32 %v686_v2, %v474_v52  ;;  %v3899_v44 = vadd.f32 %v687_v53, %v475_v29  ;;  %v3901_v23 = vadd.f32 %v688_v12, %v476_v3  ;;  %v3903_v25 = vadd.f32 %v689_v21, %v477_v0 }
 0x184   : > { %v3905_v43 = vadd.f32 %v690_v18, %v478_v28  ;;  %v3907_v1 = vadd.f32 %v691_v36, %v479_v58  ;;  %v3911_v56 = vadd.f32 %v692_v17, %v480_v9  ;;  %vm891_vm7 = vcmp.ge.f32.partialorder %v3859_v15, 3.32 }
 0x185   : > { %vm892_vm1 = vcmp.ge.f32.partialorder %v3861_v16, 3.32  ;;  %vm1003_vm2 = vcmp.ge.f32.partialorder %v3859_v15, 0.0  ;;  %v3916_v20 = vadd.f32 %v693_v59, %v481_v55  ;;  %vm893_vm4 = vcmp.ge.f32.partialorder %v3863_v40, 3.32 }
 0x186   : > { %vm894_vm9 = vcmp.ge.f32.partialorder %v3865_v13, 3.32  ;;  %vm1004_vm14 = vcmp.ge.f32.partialorder %v3861_v16, 0.0  ;;  %vm1005_vm3 = vcmp.ge.f32.partialorder %v3863_v40, 0.0  ;;  %v5026_v26 = vmov 0.01  }
 0x187   : > { %v5025_v32 = vld [vmem:[#allocation93_spill] sm:$0xff]  ;;  %vm897_vm11 = vcmp.ge.f32.partialorder %v3871_v41, 3.32  ;;  %vm1006_vm10 = vcmp.ge.f32.partialorder %v3865_v13, 0.0  ;;  %v1115_v29 = vsel %vm1003_vm2, 1.0, %v5026_v26  ;;  %vm1007_vm0 = vcmp.ge.f32.partialorder %v3867_v49, 0.0 }
 0x188   : > { %vm890_vm12 = vcmp.ge.f32.partialorder %v5025_v32, 3.32  ;;  %vm1002_vm6 = vcmp.ge.f32.partialorder %v5025_v32, 0.0  ;;  %vm899_vm15 = vcmp.ge.f32.partialorder %v3875_v50, 3.32  ;;  %v1116_v3 = vsel %vm1004_vm14, 1.0, %v5026_v26 }
 0x189   : > { %v1114_v52 = vsel %vm1002_vm6, 1.0, %v5026_v26  ;;  %vm900_vm5 = vcmp.ge.f32.partialorder %v3877_v10, 3.32  ;;  %vm1008_vm6 = vcmp.ge.f32.partialorder %v3869_v35, 0.0  ;;  %v1117_v0 = vsel %vm1005_vm3, 1.0, %v5026_v26 }
 0x18a   : > { %v1226_v28 = vsel %vm890_vm12, -0.00674, %v1114_v52  ;;  %vm902_vm8 = vcmp.ge.f32.partialorder %v3881_v34, 3.32  ;;  %vm1009_vm2 = vcmp.ge.f32.partialorder %v3871_v41, 0.0  ;;  %v1118_v58 = vsel %vm1006_vm10, 1.0, %v5026_v26 }
 0x18b   : > { %v1227_v9 = vsel %vm891_vm7, -0.00674, %v1115_v29  ;;  %vm903_vm14 = vcmp.ge.f32.partialorder %v3883_v62, 3.32  ;;  %vm1010_vm13 = vcmp.ge.f32.partialorder %v3873_v42, 0.0  ;;  %v1119_v55 = vsel %vm1007_vm0, 1.0, %v5026_v26 }
 0x18c   : > { %v1228_v14 = vsel %vm892_vm1, -0.00674, %v1116_v3  ;;  %vm904_vm12 = vcmp.ge.f32.partialorder %v3885_v60, 3.32  ;;  %vm1011_vm3 = vcmp.ge.f32.partialorder %v3875_v50, 0.0  ;;  %v1120_v8 = vsel %vm1008_vm6, 1.0, %v5026_v26 }
 0x18d   : > { %v1229_v30 = vsel %vm893_vm4, -0.00674, %v1117_v0  ;;  %v1338_v46 = vmul.f32 %v1226_v28, %v5025_v32  ;;  %vm905_vm7 = vcmp.ge.f32.partialorder %v3887_v33, 3.32  ;;  %vm1012_vm10 = vcmp.ge.f32.partialorder %v3877_v10, 0.0 }
 0x18e   : > { %v1121_v31 = vsel %vm1009_vm2, 1.0, %v5026_v26  ;;  %v1230_v63 = vsel %vm894_vm9, -0.00674, %v1118_v58  ;;  %v1339_v22 = vmul.f32 %v1227_v9, %v3859_v15  ;;  %vm906_vm1 = vcmp.ge.f32.partialorder %v3889_v6, 3.32 }
 0x18f   : > { %vm1013_vm0 = vcmp.ge.f32.partialorder %v3879_v57, 0.0  ;;  %v1122_v48 = vsel %vm1010_vm13, 1.0, %v5026_v26  ;;  %vm5027_vm4 = vcmp.ge.f32.partialorder %v3867_v49, 3.32  ;;  %v1340_v11 = vmul.f32 %v1228_v14, %v3861_v16  ;;  %1450 = vst [vmem:[%s2673_s22 + $0xe0] sm:$0xff] %v1338_v46 }
 0x190   : > { %v1231_v7 = vsel %vm5027_vm4, -0.00674, %v1119_v55  ;;  %vm907_vm6 = vcmp.ge.f32.partialorder %v3891_v51, 3.32  ;;  %vm1014_vm2 = vcmp.ge.f32.partialorder %v3881_v34, 0.0  ;;  %v1123_v54 = vsel %vm1011_vm3, 1.0, %v5026_v26 }
 0x191   : > { %vm5028_vm9 = vcmp.ge.f32.partialorder %v3869_v35, 3.32  ;;  %v1341_v5 = vmul.f32 %v1229_v30, %v3863_v40  ;;  %vm1015_vm4 = vcmp.ge.f32.partialorder %v3883_v62, 0.0  ;;  %v1124_v38 = vsel %vm1012_vm10, 1.0, %v5026_v26  ;;  %1451 = vst [vmem:[%s2673_s22 + $0xe8] sm:$0xff] %v1339_v22 }
 0x192   : > { %v1232_v61 = vsel %vm5028_vm9, -0.00674, %v1120_v8  ;;  %v1233_v39 = vsel %vm897_vm11, -0.00674, %v1121_v31  ;;  %v1342_v4 = vmul.f32 %v1230_v63, %v3865_v13  ;;  %vm909_vm3 = vcmp.ge.f32.partialorder %v3895_v24, 3.32 }
 0x193   : > { %vm1016_vm9 = vcmp.ge.f32.partialorder %v3885_v60, 0.0  ;;  %v1125_v45 = vsel %vm1013_vm0, 1.0, %v5026_v26  ;;  %vm5029_vm13 = vcmp.ge.f32.partialorder %v3873_v42, 3.32  ;;  %v1343_v47 = vmul.f32 %v1231_v7, %v3867_v49  ;;  %1452 = vst [vmem:[%s2673_s22 + $0xf0] sm:$0xff] %v1340_v11 }
 0x194   : > { %v1234_v19 = vsel %vm5029_vm13, -0.00674, %v1122_v48  ;;  %vm910_vm11 = vcmp.ge.f32.partialorder %v3897_v27, 3.32  ;;  %vm1017_vm10 = vcmp.ge.f32.partialorder %v3887_v33, 0.0  ;;  %v1126_v2 = vsel %vm1014_vm2, 1.0, %v5026_v26 }
 0x195   : > { %v1235_v53 = vsel %vm899_vm15, -0.00674, %v1123_v54  ;;  %v1344_v12 = vmul.f32 %v1232_v61, %v3869_v35  ;;  %vm1018_vm13 = vcmp.ge.f32.partialorder %v3889_v6, 0.0  ;;  %v1127_v21 = vsel %vm1015_vm4, 1.0, %v5026_v26  ;;  %1453 = vst [vmem:[%s2673_s22 + $0xf8] sm:$0xff] %v1341_v5 }
 0x196   : > { %v1236_v18 = vsel %vm900_vm5, -0.00674, %v1124_v38  ;;  %v1345_v36 = vmul.f32 %v1233_v39, %v3871_v41  ;;  %vm912_vm15 = vcmp.ge.f32.partialorder %v3901_v23, 3.32  ;;  %vm1019_vm2 = vcmp.ge.f32.partialorder %v3891_v51, 0.0  ;;  %1454 = vst [vmem:[%s2673_s22 + $0x100] sm:$0xff] %v1342_v4 }
 0x197   : > { %v1128_v17 = vsel %vm1016_vm9, 1.0, %v5026_v26  ;;  %vm5030_vm0 = vcmp.ge.f32.partialorder %v3879_v57, 3.32  ;;  %v1346_v15 = vmul.f32 %v1234_v19, %v3873_v42  ;;  %vm913_vm5 = vcmp.ge.f32.partialorder %v3903_v25, 3.32  ;;  %1455 = vst [vmem:[%s2673_s22 + $0x108] sm:$0xff] %v1343_v47 }
 0x198   : > { %v1237_v59 = vsel %vm5030_vm0, -0.00674, %v1125_v45  ;;  %vm1020_vm4 = vcmp.ge.f32.partialorder %v3893_v37, 0.0  ;;  %v1129_v16 = vsel %vm1017_vm10, 1.0, %v5026_v26  ;;  %v1238_v40 = vsel %vm902_vm8, -0.00674, %v1126_v2 }
 0x199   : > { %v1347_v13 = vmul.f32 %v1235_v53, %v3875_v50  ;;  %vm914_vm9 = vcmp.ge.f32.partialorder %v3905_v43, 3.32  ;;  %vm1021_vm0 = vcmp.ge.f32.partialorder %v3895_v24, 0.0  ;;  %v1130_v49 = vsel %vm1018_vm13, 1.0, %v5026_v26  ;;  %1456 = vst [vmem:[%s2673_s22 + $0x110] sm:$0xff] %v1344_v12  ;;  %v1568_v47 = vld [vmem:[%s2673_s22 + $0x30] sm:$0xff] (%p1949_p4) }
 0x19a   : > { %v1239_v35 = vsel %vm903_vm14, -0.00674, %v1127_v21  ;;  %v1348_v41 = vmul.f32 %v1236_v18, %v3877_v10  ;;  %vm1022_vm8 = vcmp.ge.f32.partialorder %v3897_v27, 0.0  ;;  %v1131_v42 = vsel %vm1019_vm2, 1.0, %v5026_v26  ;;  %1457 = vst [vmem:[%s2673_s22 + $0x118] sm:$0xff] %v1345_v36  ;;  %v1570_v2 = vld [vmem:[%s2673_s22 + $0x38] sm:$0xff] (%p1949_p4) }
 0x19b   : > { %v1240_v50 = vsel %vm904_vm12, -0.00674, %v1128_v17  ;;  %v1349_v32 = vmul.f32 %v1237_v59, %v3879_v57  ;;  %vm1023_vm10 = vcmp.ge.f32.partialorder %v3899_v44, 0.0  ;;  %v1132_v10 = vsel %vm1020_vm4, 1.0, %v5026_v26  ;;  %1458 = vst [vmem:[%s2673_s22 + $0x120] sm:$0xff] %v1346_v15  ;;  %v1572_v53 = vld [vmem:[%s2673_s22 + $0x40] sm:$0xff] (%p1949_p4) }
 0x19c   : > { %v1241_v52 = vsel %vm905_vm7, -0.00674, %v1129_v16  ;;  %v1350_v29 = vmul.f32 %v1238_v40, %v3881_v34  ;;  %vm1024_vm14 = vcmp.ge.f32.partialorder %v3901_v23, 0.0  ;;  %v1133_v57 = vsel %vm1021_vm0, 1.0, %v5026_v26  ;;  %1459 = vst [vmem:[%s2673_s22 + $0x128] sm:$0xff] %v1347_v13  ;;  %v1574_v12 = vld [vmem:[%s2673_s22 + $0x48] sm:$0xff] (%p1949_p4) }
 0x19d   : > { %v1242_v3 = vsel %vm906_vm1, -0.00674, %v1130_v49  ;;  %v1351_v0 = vmul.f32 %v1239_v35, %v3883_v62  ;;  %vm1025_vm12 = vcmp.ge.f32.partialorder %v3903_v25, 0.0  ;;  %v1134_v34 = vsel %vm1022_vm8, 1.0, %v5026_v26  ;;  %1460 = vst [vmem:[%s2673_s22 + $0x130] sm:$0xff] %v1348_v41  ;;  %v1576_v21 = vld [vmem:[%s2673_s22 + $0x50] sm:$0xff] (%p1949_p4) }
 0x19e   : > { %v1243_v28 = vsel %vm907_vm6, -0.00674, %v1131_v42  ;;  %v1352_v58 = vmul.f32 %v1240_v50, %v3885_v60  ;;  %vm1026_vm7 = vcmp.ge.f32.partialorder %v3905_v43, 0.0  ;;  %v1135_v62 = vsel %vm1023_vm10, 1.0, %v5026_v26  ;;  %1461 = vst [vmem:[%s2673_s22 + $0x138] sm:$0xff] %v1349_v32  ;;  %v1578_v18 = vld [vmem:[%s2673_s22 + $0x58] sm:$0xff] (%p1949_p4) }
 0x19f   : > { %vm5031_vm1 = vcmp.ge.f32.partialorder %v3893_v37, 3.32  ;;  %v1353_v55 = vmul.f32 %v1241_v52, %v3887_v33  ;;  %vm1027_vm13 = vcmp.ge.f32.partialorder %v3907_v1, 0.0  ;;  %v1136_v60 = vsel %vm1024_vm14, 1.0, %v5026_v26  ;;  %1462 = vst [vmem:[%s2673_s22 + $0x140] sm:$0xff] %v1350_v29  ;;  %v1580_v36 = vld [vmem:[%s2673_s22 + $0x60] sm:$0xff] (%p1949_p4) }
 0x1a0   : > { %v1244_v9 = vsel %vm5031_vm1, -0.00674, %v1132_v10  ;;  %v1245_v14 = vsel %vm909_vm3, -0.00674, %v1133_v57  ;;  %v1354_v8 = vmul.f32 %v1242_v3, %v3889_v6  ;;  %vm1028_vm6 = vcmp.ge.f32.partialorder %v3911_v56, 0.0  ;;  %1463 = vst [vmem:[%s2673_s22 + $0x148] sm:$0xff] %v1351_v0 }
 0x1a1   : > { %v1137_v33 = vsel %vm1025_vm12, 1.0, %v5026_v26  ;;  %v1246_v30 = vsel %vm910_vm11, -0.00674, %v1134_v34  ;;  %v1355_v46 = vmul.f32 %v1243_v28, %v3891_v51  ;;  %vm1029_vm2 = vcmp.ge.f32.partialorder %v3916_v20, 0.0  ;;  %1464 = vst [vmem:[%s2673_s22 + $0x150] sm:$0xff] %v1352_v58  ;;  %v1582_v17 = vld [vmem:[%s2673_s22 + $0x68] sm:$0xff] (%p1949_p4) }
 0x1a2   : > { %v1138_v6 = vsel %vm1026_vm7, 1.0, %v5026_v26  ;;  %vm5032_vm3 = vcmp.ge.f32.partialorder %v3899_v44, 3.32  ;;  %v1356_v63 = vmul.f32 %v1244_v9, %v3893_v37  ;;  %vm915_vm4 = vcmp.ge.f32.partialorder %v3907_v1, 3.32  ;;  %1465 = vst [vmem:[%s2673_s22 + $0x158] sm:$0xff] %v1353_v55 }
 0x1a3   : > { %v1247_v31 = vsel %vm5032_vm3, -0.00674, %v1135_v62  ;;  %v1139_v51 = vsel %vm1027_vm13, 1.0, %v5026_v26  ;;  %v1248_v22 = vsel %vm912_vm15, -0.00674, %v1136_v60  ;;  %v1357_v48 = vmul.f32 %v1245_v14, %v3895_v24  ;;  %1466 = vst [vmem:[%s2673_s22 + $0x160] sm:$0xff] %v1354_v8 }
 0x1a4   : > { %vm916_vm11 = vcmp.ge.f32.partialorder %v3911_v56, 3.32  ;;  %v1140_v37 = vsel %vm1028_vm6, 1.0, %v5026_v26  ;;  %v1249_v7 = vsel %vm913_vm5, -0.00674, %v1137_v33  ;;  %v1358_v11 = vmul.f32 %v1246_v30, %v3897_v27  ;;  %1467 = vst [vmem:[%s2673_s22 + $0x168] sm:$0xff] %v1355_v46 }
 0x1a5   : > { %vm917_vm15 = vcmp.ge.f32.partialorder %v3916_v20, 3.32  ;;  %v1141_v24 = vsel %vm1029_vm2, 1.0, %v5026_v26  ;;  %v1250_v54 = vsel %vm914_vm9, -0.00674, %v1138_v6  ;;  %v1359_v61 = vmul.f32 %v1247_v31, %v3899_v44  ;;  %1468 = vst [vmem:[%s2673_s22 + $0x170] sm:$0xff] %v1356_v63 }
 0x1a6   : > { %v1251_v5 = vsel %vm915_vm4, -0.00674, %v1139_v51  ;;  %v1360_v27 = vmul.f32 %v1248_v22, %v3901_v23  ;;  %v1252_v38 = vsel %vm916_vm11, -0.00674, %v1140_v37  ;;  %v1361_v39 = vmul.f32 %v1249_v7, %v3903_v25  ;;  %1469 = vst [vmem:[%s2673_s22 + $0x178] sm:$0xff] %v1357_v48  ;;  %v1556_v23 = vld [vmem:[%s2673_s22] sm:$0xff] (%p1949_p4) }
 0x1a7   : > { %v1253_v26 = vsel %vm917_vm15, -0.00674, %v1141_v24  ;;  %v1362_v4 = vmul.f32 %v1250_v54, %v3905_v43  ;;  %1470 = vst [vmem:[%s2673_s22 + $0x180] sm:$0xff] %v1358_v11  ;;  %v1363_v44 = vmul.f32 %v1251_v5, %v3907_v1  ;;  %v1364_v45 = vmul.f32 %v1252_v38, %v3911_v56  ;;  %v1558_v25 = vld [vmem:[%s2673_s22 + $0x8] sm:$0xff] (%p1949_p4)  ;;  %v1560_v43 = vld [vmem:[%s2673_s22 + $0x10] sm:$0xff] (%p1949_p4)  ;;  %v1562_v1 = vld [vmem:[%s2673_s22 + $0x18] sm:$0xff] (%p1949_p4) }
 0x1a8   : > { %1471 = vst [vmem:[%s2673_s22 + $0x188] sm:$0xff] %v1359_v61  ;;  %v1365_v19 = vmul.f32 %v1253_v26, %v3916_v20  ;;  %v1564_v56 = vld [vmem:[%s2673_s22 + $0x20] sm:$0xff] (%p1949_p4)  ;;  %v1566_v20 = vld [vmem:[%s2673_s22 + $0x28] sm:$0xff] (%p1949_p4)  ;;  %v1584_v59 = vld [vmem:[%s2673_s22 + $0x70] sm:$0xff] (%p1949_p4) }
 0x1a9   : > { %1472 = vst [vmem:[%s2673_s22 + $0x190] sm:$0xff] %v1360_v27  ;;  %v1586_v15 = vld [vmem:[%s2673_s22 + $0x78] sm:$0xff] (%p1949_p4)  ;;  %v1588_v16 = vld [vmem:[%s2673_s22 + $0x80] sm:$0xff] (%p1949_p4)  ;;  %v1590_v40 = vld [vmem:[%s2673_s22 + $0x88] sm:$0xff] (%p1949_p4) }
 0x1aa   : > { %1473 = vst [vmem:[%s2673_s22 + $0x198] sm:$0xff] %v1361_v39  ;;  %1540 = sbr.rel (!%p1949_p4) target bundleno = 543 (0x21f), region = 36  ;;  %v1592_v13 = vld [vmem:[%s2673_s22 + $0x90] sm:$0xff] (%p1949_p4)  ;;  %v1594_v49 = vld [vmem:[%s2673_s22 + $0x98] sm:$0xff] (%p1949_p4)  ;;  %v1596_v35 = vld [vmem:[%s2673_s22 + $0xa0] sm:$0xff] (%p1949_p4) }
 0x1ab   : > { %1474 = vst [vmem:[%s2673_s22 + $0x1a0] sm:$0xff] %v1362_v4  ;;  %v1598_v41 = vld [vmem:[%s2673_s22 + $0xa8] sm:$0xff] (%p1949_p4)  ;;  %v1600_v42 = vld [vmem:[%s2673_s22 + $0xb0] sm:$0xff] (%p1949_p4)  ;;  %v1602_v50 = vld [vmem:[%s2673_s22 + $0xb8] sm:$0xff] (%p1949_p4) }
 0x1ac   : > { %1475 = vst [vmem:[%s2673_s22 + $0x1a8] sm:$0xff] %v1363_v44  ;;  %v1604_v32 = vld [vmem:[%s2673_s22 + $0xc0] sm:$0xff] (%p1949_p4)  ;;  %v1606_v10 = vld [vmem:[%s2673_s22 + $0xc8] sm:$0xff] (%p1949_p4)  ;;  %v1608_v52 = vld [vmem:[%s2673_s22 + $0xd0] sm:$0xff] (%p1949_p4) }
 0x1ad   : > { %1476 = vst [vmem:[%s2673_s22 + $0x1b0] sm:$0xff] %v1364_v45  ;;  %v1610_v29 = vld [vmem:[%s2673_s22 + $0xd8] sm:$0xff] (%p1949_p4)  ;;  %v1612_v57 = vld [vmem:[%s2673_s22 + $0xe0] sm:$0xff] (%p1949_p4)  ;;  %v1614_v3 = vld [vmem:[%s2673_s22 + $0xe8] sm:$0xff] (%p1949_p4) }
 0x1ae   : > { %1477 = vst [vmem:[%s2673_s22 + $0x1b8] sm:$0xff] %v1365_v19  ;;  %v1616_v0 = vld [vmem:[%s2673_s22 + $0xf0] sm:$0xff] (%p1949_p4)  ;;  %v1618_v34 = vld [vmem:[%s2673_s22 + $0xf8] sm:$0xff] (%p1949_p4)  ;;  %v1620_v28 = vld [vmem:[%s2673_s22 + $0x100] sm:$0xff] (%p1949_p4) }
 0x1af   : > { %1557 = vst [vmem:[%s4149_s26] sm:$0xff] %v1556_v23  ;;  %v1622_v58 = vld [vmem:[%s2673_s22 + $0x108] sm:$0xff]  ;;  %v1624_v62 = vld [vmem:[%s2673_s22 + $0x110] sm:$0xff]  ;;  %v1626_v9 = vld [vmem:[%s2673_s22 + $0x118] sm:$0xff] }
 0x1b0   : > { %1559 = vst [vmem:[%s4149_s26 + $0x8] sm:$0xff] %v1558_v25  ;;  %v1628_v55 = vld [vmem:[%s2673_s22 + $0x120] sm:$0xff]  ;;  %v1630_v60 = vld [vmem:[%s2673_s22 + $0x128] sm:$0xff]  ;;  %v1632_v14 = vld [vmem:[%s2673_s22 + $0x130] sm:$0xff] }
 0x1b1   : > { %1561 = vst [vmem:[%s4149_s26 + $0x10] sm:$0xff] %v1560_v43  ;;  %v1634_v8 = vld [vmem:[%s2673_s22 + $0x138] sm:$0xff]  ;;  %v1636_v33 = vld [vmem:[%s2673_s22 + $0x140] sm:$0xff]  ;;  %v1638_v30 = vld [vmem:[%s2673_s22 + $0x148] sm:$0xff] }
 0x1b2   : > { %1563 = vst [vmem:[%s4149_s26 + $0x18] sm:$0xff] %v1562_v1  ;;  %v1640_v46 = vld [vmem:[%s2673_s22 + $0x150] sm:$0xff]  ;;  %v1642_v6 = vld [vmem:[%s2673_s22 + $0x158] sm:$0xff]  ;;  %v1644_v31 = vld [vmem:[%s2673_s22 + $0x160] sm:$0xff] }
 0x1b3   : > { %1565 = vst [vmem:[%s4149_s26 + $0x20] sm:$0xff] %v1564_v56  ;;  %v1646_v63 = vld [vmem:[%s2673_s22 + $0x168] sm:$0xff]  ;;  %v1648_v51 = vld [vmem:[%s2673_s22 + $0x170] sm:$0xff]  ;;  %v1650_v22 = vld [vmem:[%s2673_s22 + $0x178] sm:$0xff] }
 0x1b4   : > { %1567 = vst [vmem:[%s4149_s26 + $0x28] sm:$0xff] %v1566_v20  ;;  %v1652_v48 = vld [vmem:[%s2673_s22 + $0x180] sm:$0xff]  ;;  %v1654_v37 = vld [vmem:[%s2673_s22 + $0x188] sm:$0xff]  ;;  %v1656_v7 = vld [vmem:[%s2673_s22 + $0x190] sm:$0xff] }
 0x1b5   : > { %1569 = vst [vmem:[%s4149_s26 + $0x30] sm:$0xff] %v1568_v47  ;;  %v1658_v11 = vld [vmem:[%s2673_s22 + $0x198] sm:$0xff]  ;;  %v1660_v24 = vld [vmem:[%s2673_s22 + $0x1a0] sm:$0xff]  ;;  %v1662_v54 = vld [vmem:[%s2673_s22 + $0x1a8] sm:$0xff] }
 0x1b6   : > { %1571 = vst [vmem:[%s4149_s26 + $0x38] sm:$0xff] %v1570_v2  ;;  %v1664_v61 = vld [vmem:[%s2673_s22 + $0x1b0] sm:$0xff]  ;;  %v1666_v5 = vld [vmem:[%s2673_s22 + $0x1b8] sm:$0xff]  ;;  %v1668_v27 = vld [vmem:[%s2673_s22 + $0x1c0] sm:$0xff] }
 0x1b7   : > { %1573 = vst [vmem:[%s4149_s26 + $0x40] sm:$0xff] %v1572_v53  ;;  %v1670_v38 = vld [vmem:[%s2673_s22 + $0x1c8] sm:$0xff]  ;;  %v1672_v39 = vld [vmem:[%s2673_s22 + $0x1d0] sm:$0xff]  ;;  %v1674_v26 = vld [vmem:[%s2673_s22 + $0x1d8] sm:$0xff] }
 0x1b8   : > { %1575 = vst [vmem:[%s4149_s26 + $0x48] sm:$0xff] %v1574_v12  ;;  %v1676_v4 = vld [vmem:[%s2673_s22 + $0x1e0] sm:$0xff]  ;;  %v1678_v44 = vld [vmem:[%s2673_s22 + $0x1e8] sm:$0xff]  ;;  %v1680_v45 = vld [vmem:[%s2673_s22 + $0x1f0] sm:$0xff] }
 0x1b9   : > { %1577 = vst [vmem:[%s4149_s26 + $0x50] sm:$0xff] %v1576_v21  ;;  %v1682_v19 = vld [vmem:[%s2673_s22 + $0x1f8] sm:$0xff]  ;;  %v1684_v23 = vld [vmem:[%s2673_s22 + $0x200] sm:$0xff]  ;;  %v1686_v25 = vld [vmem:[%s2673_s22 + $0x208] sm:$0xff] }
 0x1ba   : > { %1579 = vst [vmem:[%s4149_s26 + $0x58] sm:$0xff] %v1578_v18  ;;  %v1688_v43 = vld [vmem:[%s2673_s22 + $0x210] sm:$0xff]  ;;  %v1690_v1 = vld [vmem:[%s2673_s22 + $0x218] sm:$0xff]  ;;  %v1692_v56 = vld [vmem:[%s2673_s22 + $0x220] sm:$0xff] }
 0x1bb   : > { %1581 = vst [vmem:[%s4149_s26 + $0x60] sm:$0xff] %v1580_v36  ;;  %v1694_v20 = vld [vmem:[%s2673_s22 + $0x228] sm:$0xff]  ;;  %v1696_v47 = vld [vmem:[%s2673_s22 + $0x230] sm:$0xff]  ;;  %v1698_v2 = vld [vmem:[%s2673_s22 + $0x238] sm:$0xff] }
 0x1bc   : > { %1583 = vst [vmem:[%s4149_s26 + $0x68] sm:$0xff] %v1582_v17  ;;  %v1700_v53 = vld [vmem:[%s2673_s22 + $0x240] sm:$0xff]  ;;  %v1702_v12 = vld [vmem:[%s2673_s22 + $0x248] sm:$0xff]  ;;  %v1704_v21 = vld [vmem:[%s2673_s22 + $0x250] sm:$0xff] }
 0x1bd   : > { %1585 = vst [vmem:[%s4149_s26 + $0x70] sm:$0xff] %v1584_v59  ;;  %v1706_v18 = vld [vmem:[%s2673_s22 + $0x258] sm:$0xff]  ;;  %v1708_v36 = vld [vmem:[%s2673_s22 + $0x260] sm:$0xff]  ;;  %v1710_v17 = vld [vmem:[%s2673_s22 + $0x268] sm:$0xff] }
 0x1be   : > { %1587 = vst [vmem:[%s4149_s26 + $0x78] sm:$0xff] %v1586_v15  ;;  %v1712_v59 = vld [vmem:[%s2673_s22 + $0x270] sm:$0xff]  ;;  %v1714_v15 = vld [vmem:[%s2673_s22 + $0x278] sm:$0xff] }
 0x1bf   : > { %1589 = vst [vmem:[%s4149_s26 + $0x80] sm:$0xff] %v1588_v16  ;;  %v1716_v16 = vld [vmem:[%s2673_s22 + $0x280] sm:$0xff] }
 0x1c0   : > { %1591 = vst [vmem:[%s4149_s26 + $0x88] sm:$0xff] %v1590_v40  ;;  %v1718_v40 = vld [vmem:[%s2673_s22 + $0x288] sm:$0xff] }
 0x1c1   : > { %1593 = vst [vmem:[%s4149_s26 + $0x90] sm:$0xff] %v1592_v13  ;;  %v1720_v13 = vld [vmem:[%s2673_s22 + $0x290] sm:$0xff] }
 0x1c2   : > { %1595 = vst [vmem:[%s4149_s26 + $0x98] sm:$0xff] %v1594_v49  ;;  %v1722_v49 = vld [vmem:[%s2673_s22 + $0x298] sm:$0xff] }
 0x1c3   : > { %1597 = vst [vmem:[%s4149_s26 + $0xa0] sm:$0xff] %v1596_v35  ;;  %v1724_v35 = vld [vmem:[%s2673_s22 + $0x2a0] sm:$0xff] }
 0x1c4   : > { %1599 = vst [vmem:[%s4149_s26 + $0xa8] sm:$0xff] %v1598_v41  ;;  %v1726_v41 = vld [vmem:[%s2673_s22 + $0x2a8] sm:$0xff] }
 0x1c5   : > { %1601 = vst [vmem:[%s4149_s26 + $0xb0] sm:$0xff] %v1600_v42  ;;  %v1728_v42 = vld [vmem:[%s2673_s22 + $0x2b0] sm:$0xff] }
 0x1c6   : > { %1603 = vst [vmem:[%s4149_s26 + $0xb8] sm:$0xff] %v1602_v50  ;;  %v1730_v50 = vld [vmem:[%s2673_s22 + $0x2b8] sm:$0xff] }
 0x1c7   : > { %1605 = vst [vmem:[%s4149_s26 + $0xc0] sm:$0xff] %v1604_v32  ;;  %v1732_v32 = vld [vmem:[%s2673_s22 + $0x2c0] sm:$0xff] }
 0x1c8   : > { %1607 = vst [vmem:[%s4149_s26 + $0xc8] sm:$0xff] %v1606_v10  ;;  %v1734_v10 = vld [vmem:[%s2673_s22 + $0x2c8] sm:$0xff] }
 0x1c9   : > { %1609 = vst [vmem:[%s4149_s26 + $0xd0] sm:$0xff] %v1608_v52  ;;  %v1736_v52 = vld [vmem:[%s2673_s22 + $0x2d0] sm:$0xff] }
 0x1ca   : > { %1611 = vst [vmem:[%s4149_s26 + $0xd8] sm:$0xff] %v1610_v29  ;;  %v1738_v29 = vld [vmem:[%s2673_s22 + $0x2d8] sm:$0xff] }
 0x1cb   : > { %1613 = vst [vmem:[%s4149_s26 + $0x1c0] sm:$0xff] %v1612_v57  ;;  %v1740_v57 = vld [vmem:[%s2673_s22 + $0x2e0] sm:$0xff] }
 0x1cc   : > { %1615 = vst [vmem:[%s4149_s26 + $0x1c8] sm:$0xff] %v1614_v3  ;;  %v1742_v3 = vld [vmem:[%s2673_s22 + $0x2e8] sm:$0xff] }
 0x1cd   : > { %1617 = vst [vmem:[%s4149_s26 + $0x1d0] sm:$0xff] %v1616_v0  ;;  %v1744_v0 = vld [vmem:[%s2673_s22 + $0x2f0] sm:$0xff] }
 0x1ce   : > { %1619 = vst [vmem:[%s4149_s26 + $0x1d8] sm:$0xff] %v1618_v34  ;;  %v1746_v34 = vld [vmem:[%s2673_s22 + $0x2f8] sm:$0xff] }
 0x1cf   : > { %1621 = vst [vmem:[%s4149_s26 + $0x1e0] sm:$0xff] %v1620_v28  ;;  %v1748_v28 = vld [vmem:[%s2673_s22 + $0x300] sm:$0xff] }
 0x1d0   : > { %1623 = vst [vmem:[%s4149_s26 + $0x1e8] sm:$0xff] %v1622_v58  ;;  %v1750_v58 = vld [vmem:[%s2673_s22 + $0x308] sm:$0xff] }
 0x1d1   : > { %1625 = vst [vmem:[%s4149_s26 + $0x1f0] sm:$0xff] %v1624_v62  ;;  %v1752_v62 = vld [vmem:[%s2673_s22 + $0x310] sm:$0xff] }
 0x1d2   : > { %1627 = vst [vmem:[%s4149_s26 + $0x1f8] sm:$0xff] %v1626_v9  ;;  %v1754_v9 = vld [vmem:[%s2673_s22 + $0x318] sm:$0xff] }
 0x1d3   : > { %1629 = vst [vmem:[%s4149_s26 + $0x200] sm:$0xff] %v1628_v55  ;;  %v1756_v55 = vld [vmem:[%s2673_s22 + $0x320] sm:$0xff] }
 0x1d4   : > { %1631 = vst [vmem:[%s4149_s26 + $0x208] sm:$0xff] %v1630_v60  ;;  %v1758_v60 = vld [vmem:[%s2673_s22 + $0x328] sm:$0xff] }
 0x1d5   : > { %1633 = vst [vmem:[%s4149_s26 + $0x210] sm:$0xff] %v1632_v14  ;;  %v1760_v14 = vld [vmem:[%s2673_s22 + $0x330] sm:$0xff] }
 0x1d6   : > { %1635 = vst [vmem:[%s4149_s26 + $0x218] sm:$0xff] %v1634_v8  ;;  %v1762_v8 = vld [vmem:[%s2673_s22 + $0x338] sm:$0xff] }
 0x1d7   : > { %1637 = vst [vmem:[%s4149_s26 + $0x220] sm:$0xff] %v1636_v33  ;;  %v1764_v33 = vld [vmem:[%s2673_s22 + $0x340] sm:$0xff] }
 0x1d8   : > { %1639 = vst [vmem:[%s4149_s26 + $0x228] sm:$0xff] %v1638_v30  ;;  %v1766_v30 = vld [vmem:[%s2673_s22 + $0x348] sm:$0xff] }
 0x1d9   : > { %1641 = vst [vmem:[%s4149_s26 + $0x230] sm:$0xff] %v1640_v46  ;;  %v1768_v46 = vld [vmem:[%s2673_s22 + $0x350] sm:$0xff] }
 0x1da   : > { %1643 = vst [vmem:[%s4149_s26 + $0x238] sm:$0xff] %v1642_v6  ;;  %v1770_v6 = vld [vmem:[%s2673_s22 + $0x358] sm:$0xff] }
 0x1db   : > { %1645 = vst [vmem:[%s4149_s26 + $0x240] sm:$0xff] %v1644_v31  ;;  %v1772_v31 = vld [vmem:[%s2673_s22 + $0x360] sm:$0xff] }
 0x1dc   : > { %1647 = vst [vmem:[%s4149_s26 + $0x248] sm:$0xff] %v1646_v63  ;;  %v1774_v63 = vld [vmem:[%s2673_s22 + $0x368] sm:$0xff] }
 0x1dd   : > { %1649 = vst [vmem:[%s4149_s26 + $0x250] sm:$0xff] %v1648_v51  ;;  %v1776_v51 = vld [vmem:[%s2673_s22 + $0x370] sm:$0xff] }
 0x1de   : > { %1651 = vst [vmem:[%s4149_s26 + $0x258] sm:$0xff] %v1650_v22  ;;  %v1778_v22 = vld [vmem:[%s2673_s22 + $0x378] sm:$0xff] }
 0x1df   : > { %1653 = vst [vmem:[%s4149_s26 + $0x260] sm:$0xff] %v1652_v48 }
 0x1e0   : > { %1655 = vst [vmem:[%s4149_s26 + $0x268] sm:$0xff] %v1654_v37 }
 0x1e1   : > { %1657 = vst [vmem:[%s4149_s26 + $0x270] sm:$0xff] %v1656_v7 }
 0x1e2   : > { %1659 = vst [vmem:[%s4149_s26 + $0x278] sm:$0xff] %v1658_v11 }
 0x1e3   : > { %1661 = vst [vmem:[%s4149_s26 + $0x280] sm:$0xff] %v1660_v24 }
 0x1e4   : > { %1663 = vst [vmem:[%s4149_s26 + $0x288] sm:$0xff] %v1662_v54 }
 0x1e5   : > { %1665 = vst [vmem:[%s4149_s26 + $0x290] sm:$0xff] %v1664_v61 }
 0x1e6   : > { %1667 = vst [vmem:[%s4149_s26 + $0x298] sm:$0xff] %v1666_v5 }
 0x1e7   : > { %1669 = vst [vmem:[%s4149_s26 + $0x380] sm:$0xff] %v1668_v27 }
 0x1e8   : > { %1671 = vst [vmem:[%s4149_s26 + $0x388] sm:$0xff] %v1670_v38 }
 0x1e9   : > { %1673 = vst [vmem:[%s4149_s26 + $0x390] sm:$0xff] %v1672_v39 }
 0x1ea   : > { %1675 = vst [vmem:[%s4149_s26 + $0x398] sm:$0xff] %v1674_v26 }
 0x1eb   : > { %1677 = vst [vmem:[%s4149_s26 + $0x3a0] sm:$0xff] %v1676_v4 }
 0x1ec   : > { %1679 = vst [vmem:[%s4149_s26 + $0x3a8] sm:$0xff] %v1678_v44 }
 0x1ed   : > { %1681 = vst [vmem:[%s4149_s26 + $0x3b0] sm:$0xff] %v1680_v45 }
 0x1ee   : > { %1683 = vst [vmem:[%s4149_s26 + $0x3b8] sm:$0xff] %v1682_v19 }
 0x1ef   : > { %1685 = vst [vmem:[%s4149_s26 + $0x3c0] sm:$0xff] %v1684_v23 }
 0x1f0   : > { %1687 = vst [vmem:[%s4149_s26 + $0x3c8] sm:$0xff] %v1686_v25 }
 0x1f1   : > { %1689 = vst [vmem:[%s4149_s26 + $0x3d0] sm:$0xff] %v1688_v43 }
 0x1f2   : > { %1691 = vst [vmem:[%s4149_s26 + $0x3d8] sm:$0xff] %v1690_v1 }
 0x1f3   : > { %1693 = vst [vmem:[%s4149_s26 + $0x3e0] sm:$0xff] %v1692_v56 }
 0x1f4   : > { %1695 = vst [vmem:[%s4149_s26 + $0x3e8] sm:$0xff] %v1694_v20 }
 0x1f5   : > { %1697 = vst [vmem:[%s4149_s26 + $0x3f0] sm:$0xff] %v1696_v47 }
 0x1f6   : > { %1699 = vst [vmem:[%s4149_s26 + $0x3f8] sm:$0xff] %v1698_v2 }
 0x1f7   : > { %1701 = vst [vmem:[%s4149_s26 + $0x400] sm:$0xff] %v1700_v53 }
 0x1f8   : > { %1703 = vst [vmem:[%s4149_s26 + $0x408] sm:$0xff] %v1702_v12 }
 0x1f9   : > { %1705 = vst [vmem:[%s4149_s26 + $0x410] sm:$0xff] %v1704_v21 }
 0x1fa   : > { %1707 = vst [vmem:[%s4149_s26 + $0x418] sm:$0xff] %v1706_v18 }
 0x1fb   : > { %1709 = vst [vmem:[%s4149_s26 + $0x420] sm:$0xff] %v1708_v36 }
 0x1fc   : > { %1711 = vst [vmem:[%s4149_s26 + $0x428] sm:$0xff] %v1710_v17 }
 0x1fd   : > { %1713 = vst [vmem:[%s4149_s26 + $0x430] sm:$0xff] %v1712_v59 }
 0x1fe   : > { %1715 = vst [vmem:[%s4149_s26 + $0x438] sm:$0xff] %v1714_v15 }
 0x1ff   : > { %1717 = vst [vmem:[%s4149_s26 + $0x440] sm:$0xff] %v1716_v16 }
 0x200   : > { %1719 = vst [vmem:[%s4149_s26 + $0x448] sm:$0xff] %v1718_v40 }
 0x201   : > { %1721 = vst [vmem:[%s4149_s26 + $0x450] sm:$0xff] %v1720_v13 }
 0x202   : > { %1723 = vst [vmem:[%s4149_s26 + $0x458] sm:$0xff] %v1722_v49 }
 0x203   : > { %1725 = vst [vmem:[%s4149_s26 + $0x540] sm:$0xff] %v1724_v35 }
 0x204   : > { %1727 = vst [vmem:[%s4149_s26 + $0x548] sm:$0xff] %v1726_v41 }
 0x205   : > { %1729 = vst [vmem:[%s4149_s26 + $0x550] sm:$0xff] %v1728_v42 }
 0x206   : > { %1731 = vst [vmem:[%s4149_s26 + $0x558] sm:$0xff] %v1730_v50 }
 0x207   : > { %1733 = vst [vmem:[%s4149_s26 + $0x560] sm:$0xff] %v1732_v32 }
 0x208   : > { %1735 = vst [vmem:[%s4149_s26 + $0x568] sm:$0xff] %v1734_v10 }
 0x209   : > { %1737 = vst [vmem:[%s4149_s26 + $0x570] sm:$0xff] %v1736_v52 }
 0x20a   : > { %1739 = vst [vmem:[%s4149_s26 + $0x578] sm:$0xff] %v1738_v29 }
 0x20b   : > { %1741 = vst [vmem:[%s4149_s26 + $0x580] sm:$0xff] %v1740_v57 }
 0x20c   : > { %1743 = vst [vmem:[%s4149_s26 + $0x588] sm:$0xff] %v1742_v3 }
 0x20d   : > { %1745 = vst [vmem:[%s4149_s26 + $0x590] sm:$0xff] %v1744_v0 }
 0x20e   : > { %1747 = vst [vmem:[%s4149_s26 + $0x598] sm:$0xff] %v1746_v34 }
 0x20f   : > { %1749 = vst [vmem:[%s4149_s26 + $0x5a0] sm:$0xff] %v1748_v28 }
 0x210   : > { %1751 = vst [vmem:[%s4149_s26 + $0x5a8] sm:$0xff] %v1750_v58 }
 0x211   : > { %1753 = vst [vmem:[%s4149_s26 + $0x5b0] sm:$0xff] %v1752_v62 }
 0x212   : > { %1755 = vst [vmem:[%s4149_s26 + $0x5b8] sm:$0xff] %v1754_v9 }
 0x213   : > { %1757 = vst [vmem:[%s4149_s26 + $0x5c0] sm:$0xff] %v1756_v55 }
 0x214   : > { %1759 = vst [vmem:[%s4149_s26 + $0x5c8] sm:$0xff] %v1758_v60 }
 0x215   : > { %1761 = vst [vmem:[%s4149_s26 + $0x5d0] sm:$0xff] %v1760_v14 }
 0x216   : > { %1763 = vst [vmem:[%s4149_s26 + $0x5d8] sm:$0xff] %v1762_v8 }
 0x217   : > { %1765 = vst [vmem:[%s4149_s26 + $0x5e0] sm:$0xff] %v1764_v33 }
 0x218   : > { %1767 = vst [vmem:[%s4149_s26 + $0x5e8] sm:$0xff] %v1766_v30 }
 0x219   : > { %1769 = vst [vmem:[%s4149_s26 + $0x5f0] sm:$0xff] %v1768_v46 }
 0x21a   : > { %1771 = vst [vmem:[%s4149_s26 + $0x5f8] sm:$0xff] %v1770_v6 }
 0x21b   : > { %1773 = vst [vmem:[%s4149_s26 + $0x600] sm:$0xff] %v1772_v31 }
 0x21c   : > { %1775 = vst [vmem:[%s4149_s26 + $0x608] sm:$0xff] %v1774_v63 }
 0x21d   : > { %1777 = vst [vmem:[%s4149_s26 + $0x610] sm:$0xff] %v1776_v51 }
 0x21e   : > { %1779 = vst [vmem:[%s4149_s26 + $0x618] sm:$0xff] %v1778_v22 }
 0x21f PF: > { %p10_p8 = scmp.ge.s32.totalorder %s1939_s16, 4   ;;  %s5033_s12 = smov %s1895_s13 }
 0x220   : > { %s5034_s13 = smov %s1947_s19  ;;  %s5035_s14 = smov %s1939_s16 }
 0x221   :  { %12 = sbr.rel (!%p10_p8) target bundleno = 2 (0x2), region = 85 }

</bundles_post_ra>
